<compile_context>
chip_gen: v7x
topology: tpu7x:2x2x1
jax: 0.10.0
libtpu: 0.0.40
codegen_flags: <defaults>
</compile_context>

<pallas_src>
import functools
import math

import jax
import jax.numpy as jnp
from jax.experimental import pallas as pl
from jax.experimental.pallas import tpu as pltpu


# ----------------------------- kernel helpers -------------------------------

def _layernorm(x, g, b, eps=1e-12):
    mu = jnp.mean(x, axis=-1, keepdims=True)
    xc = x - mu
    var = jnp.mean(xc * xc, axis=-1, keepdims=True)
    return xc * jax.lax.rsqrt(var + eps) * g + b


def _gelu_tanh(x):
    c = 0.7978845608028654  # sqrt(2/pi)
    return 0.5 * x * (1.0 + jnp.tanh(c * (x + 0.044715 * x * x * x)))


# ----------------------------- fused Pallas kernel ---------------------------

def encoder_layer_kernel(
        x_emb_ref, mask_ref, embg_ref, embb_ref,
        wq_ref, bq_ref, wk_ref, bk_ref, wv_ref, bv_ref,
        wo_ref, bo_ref, ln1g_ref, ln1b_ref,
        w1_ref, b1_ref, w2_ref, b2_ref, ln2g_ref, ln2b_ref,
        y_ref,
        logits_ref, losses_ref,
        x_scr, addm_scr):
    """One grid step = (batch tile b, encoder layer l).

    x_emb block: [2, tb, S, H]  (index 0 = query tower, 1 = doc tower)
    Weights are per-layer blocks (leading dim 1) streamed by the pipeline.
    The hidden state lives in x_scr ([2*tb, S, H], f32) across the l axis.
    """
    l = pl.program_id(1)
    n_layers = pl.num_programs(1)
    _, tb, S, H = x_emb_ref.shape
    N = 2 * tb

    # ---- prologue (once per batch tile): embedding LN + additive mask ----
    @pl.when(l == 0)
    def _():
        xe = x_emb_ref[...].astype(jnp.float32).reshape(N, S, H)
        x_scr[...] = _layernorm(xe, embg_ref[...], embb_ref[...])
        m = mask_ref[...].reshape(N, S)
        addm_scr[...] = (1.0 - m) * (-1e9)

    x = x_scr[...]                                   # [N, S, H] f32, resident
    add = addm_scr[...][:, None, :]                  # [N, 1, S]
    scale = 1.0 / math.sqrt(float(H))

    x2d = x.reshape(N * S, H)                        # flatten batch*seq -> sublanes

    def dense(inp_f32, w_bf16, bias_f32):
        # bf16 MXU operands, f32 accumulation, f32 bias add.
        return jnp.dot(inp_f32.astype(jnp.bfloat16), w_bf16,
                       preferred_element_type=jnp.float32) + bias_f32

    q = dense(x2d, wq_ref[0], bq_ref[0]).reshape(N, S, H)
    k = dense(x2d, wk_ref[0], bk_ref[0]).reshape(N, S, H)
    v = dense(x2d, wv_ref[0], bv_ref[0]).reshape(N, S, H)

    # single-head self-attention, batched over N (contracts H; no k transpose)
    scores = jnp.einsum("bqd,bkd->bqk",
                        q.astype(jnp.bfloat16), k.astype(jnp.bfloat16),
                        preferred_element_type=jnp.float32) * scale + add
    mx = jnp.max(scores, axis=-1, keepdims=True)
    p = jnp.exp(scores - mx)
    attn = p * pl.reciprocal(jnp.sum(p, axis=-1, keepdims=True), approx=True)
    ctx = jnp.einsum("bqk,bkd->bqd",
                     attn.astype(jnp.bfloat16), v.astype(jnp.bfloat16),
                     preferred_element_type=jnp.float32)          # [N, S, H]

    attn_out = dense(ctx.reshape(N * S, H), wo_ref[0], bo_ref[0])
    h = _layernorm(x2d + attn_out, ln1g_ref[0], ln1b_ref[0])      # [N*S, H] f32

    # feed-forward (elementwise GELU stays f32)
    ff = _gelu_tanh(dense(h, w1_ref[0], b1_ref[0]))
    ff = dense(ff, w2_ref[0], b2_ref[0])
    xn = _layernorm(h + ff, ln2g_ref[0], ln2b_ref[0]).reshape(N, S, H)
    x_scr[...] = xn                                   # carry to next layer

    # ---- tail (once per batch tile): mean pool + dot logits + BCE terms ----
    @pl.when(l == n_layers - 1)
    def _():
        pooled = jnp.sum(xn, axis=1) * (1.0 / float(S))           # [N, H]
        qm = pooled[:tb, :]                                       # query embeds
        dm = pooled[tb:, :]                                       # doc embeds
        # per-row dot product == diag(qm @ dm^T); extract diag with a 2-D iota
        # mask + sublane reduce so the result is lane-dense [1, tb].
        sim = jnp.einsum("ih,jh->ij", qm, dm,
                         preferred_element_type=jnp.float32)      # [tb, tb] f32
        rr = jax.lax.broadcasted_iota(jnp.int32, (tb, tb), 0)
        cc = jax.lax.broadcasted_iota(jnp.int32, (tb, tb), 1)
        z = jnp.sum(jnp.where(rr == cc, sim, 0.0),
                    axis=0, keepdims=True)                        # [1, tb]
        logits_ref[...] = z
        # numerically stable BCE-with-logits per example (mean done outside,
        # since the batch axis is parallel across tiles/cores)
        y = y_ref[...]
        losses_ref[...] = (jnp.maximum(z, 0.0) - z * y
                           + jnp.log(1.0 + jnp.exp(-jnp.abs(z))))


# ----------------------------- wrapper ---------------------------------------

def bert_dot_bce_forward(params, context_input_ids, query_input_ids,
                         context_attention_mask, query_attention_mask, labels,
                         *, batch_tile=None):
    """Equivalent of BertDotBCEModel.forward with in_batch_neg=False."""
    B, S = query_input_ids.shape
    H = params["word_emb"].shape[1]
    F = params["w1"].shape[2]
    L = params["wq"].shape[0]

    tb = B if batch_tile is None else batch_tile
    assert B % tb == 0, "batch_tile must divide batch"
    num_bt = B // tb
    N = 2 * tb

    # Glue (plain JAX): embedding gather + tower pairing along a leading axis
    # of size 2 so every batch tile contains matching query/doc rows.
    ids = jnp.stack([query_input_ids, context_input_ids], axis=0)          # [2,B,S]
    mask = jnp.stack([query_attention_mask, context_attention_mask],
                     axis=0).astype(jnp.float32)                           # [2,B,S]
    x_emb = (jnp.take(params["word_emb"], ids, axis=0)
             + params["pos_emb"][:S][None, None, :, :]).astype(jnp.bfloat16)
    y = labels.astype(jnp.float32).reshape(1, B)

    # Matmul weights shipped bf16 (halves weight DMA + VMEM); biases/LN f32.
    bf = jnp.bfloat16
    wq, wk = params["wq"].astype(bf), params["wk"].astype(bf)
    wv, wo = params["wv"].astype(bf), params["wo"].astype(bf)
    w1, w2 = params["w1"].astype(bf), params["w2"].astype(bf)

    batch_map4 = lambda b, l: (0, b, 0, 0)   # activations: follow batch tile only
    batch_map3 = lambda b, l: (0, b, 0)
    layer_map3 = lambda b, l: (l, 0, 0)      # weights: follow layer axis only
    const_map2 = lambda b, l: (0, 0)         # embedding LN params: DMA'd once
    row_map2 = lambda b, l: (0, b)           # labels / lane-dense outputs

    in_specs = [
        pl.BlockSpec((2, tb, S, H), batch_map4),   # x_emb (bf16)
        pl.BlockSpec((2, tb, S), batch_map3),      # attention mask
        pl.BlockSpec((1, H), const_map2),          # emb LN gamma
        pl.BlockSpec((1, H), const_map2),          # emb LN beta
        pl.BlockSpec((1, H, H), layer_map3),       # wq
        pl.BlockSpec((1, 1, H), layer_map3),       # bq
        pl.BlockSpec((1, H, H), layer_map3),       # wk
        pl.BlockSpec((1, 1, H), layer_map3),       # bk
        pl.BlockSpec((1, H, H), layer_map3),       # wv
        pl.BlockSpec((1, 1, H), layer_map3),       # bv
        pl.BlockSpec((1, H, H), layer_map3),       # wo
        pl.BlockSpec((1, 1, H), layer_map3),       # bo
        pl.BlockSpec((1, 1, H), layer_map3),       # ln1 gamma
        pl.BlockSpec((1, 1, H), layer_map3),       # ln1 beta
        pl.BlockSpec((1, H, F), layer_map3),       # w1
        pl.BlockSpec((1, 1, F), layer_map3),       # b1
        pl.BlockSpec((1, F, H), layer_map3),       # w2
        pl.BlockSpec((1, 1, H), layer_map3),       # b2
        pl.BlockSpec((1, 1, H), layer_map3),       # ln2 gamma
        pl.BlockSpec((1, 1, H), layer_map3),       # ln2 beta
        pl.BlockSpec((1, tb), row_map2),           # labels
    ]
    out_specs = (pl.BlockSpec((1, tb), row_map2),  # logits   [1, B]
                 pl.BlockSpec((1, tb), row_map2))  # BCE terms [1, B]

    # Explicit VMEM budget: double-buffered per-layer bf16 weights + resident
    # activation scratch + attention scores + FFN intermediate + input block,
    # with ~2x headroom (default scoped limit is 16/32 MiB, physical 64 MiB
    # on v7x).
    w_layer = (4 * H * H + 2 * H * F) * 2 + (6 * H + F) * 4
    work = (2 * w_layer                       # double-buffered weight stream
            + N * S * H * 4 + N * S * 4       # resident x / additive mask
            + N * S * S * 4                   # attention scores
            + N * S * F * 4                   # FFN intermediate
            + 2 * (2 * tb * S * H * 2))       # double-buffered bf16 input block
    vmem_limit = int(min(max(2 * work, 16 * 1024 * 1024), 64 * 1024 * 1024))

    logits, per_losses = pl.pallas_call(
        encoder_layer_kernel,
        out_shape=(jax.ShapeDtypeStruct((1, B), jnp.float32),
                   jax.ShapeDtypeStruct((1, B), jnp.float32)),
        grid=(num_bt, L),
        in_specs=in_specs,
        out_specs=out_specs,
        scratch_shapes=[pltpu.VMEM((N, S, H), jnp.float32),   # resident hidden state
                        pltpu.VMEM((N, S), jnp.float32)],     # additive mask
        compiler_params=pltpu.CompilerParams(
            dimension_semantics=("parallel", "arbitrary"),
            vmem_limit_bytes=vmem_limit),
    )(x_emb, mask, params["emb_ln_g"], params["emb_ln_b"],
      wq, params["bq"], wk, params["bk"], wv, params["bv"],
      wo, params["bo"], params["ln1g"], params["ln1b"],
      w1, params["b1"], w2, params["b2"],
      params["ln2g"], params["ln2b"], y)

    loss = jnp.mean(per_losses)   # BCEWithLogitsLoss mean reduction
    return logits.reshape(-1), loss
    # TODO(synk): in_batch_neg=True branch (QxD^T logits with host-side numpy
    # fill_diagonal label construction) is not implemented.


# ----------------------------- parameter init --------------------------------

def init_params(key, vocab=64, max_pos=16, H=32, F=64, n_layers=2):
    """Synthetic BERT-style encoder weights, layer-stacked for weight streaming."""
    def normal(k, shape, std=0.02):
        return (std * jax.random.normal(k, shape)).astype(jnp.float32)

    L = n_layers
    keys = jax.random.split(key, 8)
    return {
        "word_emb": normal(keys[0], (vocab, H)),
        "pos_emb": normal(keys[1], (max_pos, H)),
        "emb_ln_g": jnp.ones((1, H), jnp.float32),
        "emb_ln_b": jnp.zeros((1, H), jnp.float32),
        "wq": normal(keys[2], (L, H, H)), "bq": jnp.zeros((L, 1, H), jnp.float32),
        "wk": normal(keys[3], (L, H, H)), "bk": jnp.zeros((L, 1, H), jnp.float32),
        "wv": normal(keys[4], (L, H, H)), "bv": jnp.zeros((L, 1, H), jnp.float32),
        "wo": normal(keys[5], (L, H, H)), "bo": jnp.zeros((L, 1, H), jnp.float32),
        "ln1g": jnp.ones((L, 1, H), jnp.float32), "ln1b": jnp.zeros((L, 1, H), jnp.float32),
        "w1": normal(keys[6], (L, H, F)), "b1": jnp.zeros((L, 1, F), jnp.float32),
        "w2": normal(keys[7], (L, F, H)), "b2": jnp.zeros((L, 1, H), jnp.float32),
        "ln2g": jnp.ones((L, 1, H), jnp.float32), "ln2b": jnp.zeros((L, 1, H), jnp.float32),
    }


# ----------------------------- main -------------------------------------------

if __name__ == "__main__":
    B, S, H, F = 2, 8, 32, 64
    VOCAB = 64

    key = jax.random.PRNGKey(0)
    k_param, k_cid, k_qid, k_lab = jax.random.split(key, 4)
    params = init_params(k_param, vocab=VOCAB, max_pos=S, H=H, F=F, n_layers=2)

    context_input_ids = jax.random.randint(k_cid, (B, S), 0, VOCAB, dtype=jnp.int32)
    query_input_ids = jax.random.randint(k_qid, (B, S), 0, VOCAB, dtype=jnp.int32)
    context_attention_mask = jnp.ones((B, S), jnp.int32)
    query_attention_mask = jnp.ones((B, S), jnp.int32)
    labels = jax.random.randint(k_lab, (B,), 0, 2, dtype=jnp.int32)

    fwd = jax.jit(functools.partial(bert_dot_bce_forward, params))
    logits, loss = fwd(context_input_ids, query_input_ids,
                       context_attention_mask, query_attention_mask, labels)
    jax.block_until_ready((logits, loss))
    print("KERNEL_OK")
</pallas_src>

<mosaic_0001>
module attributes {stable_mosaic.version = 11 : i64} {
  func.func @encoder_layer_kernel(%arg0: i32, %arg1: i32, %arg2: memref<2x2x8x32xbf16, #tpu.memory_space<vmem>>, %arg3: memref<2x2x8xf32, #tpu.memory_space<vmem>>, %arg4: memref<1x32xf32, #tpu.memory_space<vmem>>, %arg5: memref<1x32xf32, #tpu.memory_space<vmem>>, %arg6: memref<1x32x32xbf16, #tpu.memory_space<vmem>>, %arg7: memref<1x1x32xf32, #tpu.memory_space<vmem>>, %arg8: memref<1x32x32xbf16, #tpu.memory_space<vmem>>, %arg9: memref<1x1x32xf32, #tpu.memory_space<vmem>>, %arg10: memref<1x32x32xbf16, #tpu.memory_space<vmem>>, %arg11: memref<1x1x32xf32, #tpu.memory_space<vmem>>, %arg12: memref<1x32x32xbf16, #tpu.memory_space<vmem>>, %arg13: memref<1x1x32xf32, #tpu.memory_space<vmem>>, %arg14: memref<1x1x32xf32, #tpu.memory_space<vmem>>, %arg15: memref<1x1x32xf32, #tpu.memory_space<vmem>>, %arg16: memref<1x32x64xbf16, #tpu.memory_space<vmem>>, %arg17: memref<1x1x64xf32, #tpu.memory_space<vmem>>, %arg18: memref<1x64x32xbf16, #tpu.memory_space<vmem>>, %arg19: memref<1x1x32xf32, #tpu.memory_space<vmem>>, %arg20: memref<1x1x32xf32, #tpu.memory_space<vmem>>, %arg21: memref<1x1x32xf32, #tpu.memory_space<vmem>>, %arg22: memref<1x2xf32, #tpu.memory_space<vmem>>, %arg23: memref<1x2xf32, #tpu.memory_space<vmem>>, %arg24: memref<1x2xf32, #tpu.memory_space<vmem>>, %arg25: memref<4x8x32xf32, #tpu.memory_space<vmem>>, %arg26: memref<4x8xf32, #tpu.memory_space<vmem>>) attributes {dimension_semantics = [#tpu.dimension_semantics<parallel>, #tpu.dimension_semantics<arbitrary>], iteration_bounds = array<i64: 1, 2>, scalar_prefetch = 0 : i64, scratch_operands = 2 : i64, tpu.core_type = #tpu.core_type<tc>, window_params = [{transform_indices = @transform_0, window_bounds = array<i64: 2, 2, 8, 32>}, {transform_indices = @transform_1, window_bounds = array<i64: 2, 2, 8>}, {pipeline_mode = #tpu.pipeline_mode<synchronous>, transform_indices = @transform_2, window_bounds = array<i64: 1, 32>}, {pipeline_mode = #tpu.pipeline_mode<synchronous>, transform_indices = @transform_3, window_bounds = array<i64: 1, 32>}, {transform_indices = @transform_4, window_bounds = array<i64: 1, 32, 32>}, {transform_indices = @transform_5, window_bounds = array<i64: 1, 1, 32>}, {transform_indices = @transform_6, window_bounds = array<i64: 1, 32, 32>}, {transform_indices = @transform_7, window_bounds = array<i64: 1, 1, 32>}, {transform_indices = @transform_8, window_bounds = array<i64: 1, 32, 32>}, {transform_indices = @transform_9, window_bounds = array<i64: 1, 1, 32>}, {transform_indices = @transform_10, window_bounds = array<i64: 1, 32, 32>}, {transform_indices = @transform_11, window_bounds = array<i64: 1, 1, 32>}, {transform_indices = @transform_12, window_bounds = array<i64: 1, 1, 32>}, {transform_indices = @transform_13, window_bounds = array<i64: 1, 1, 32>}, {transform_indices = @transform_14, window_bounds = array<i64: 1, 32, 64>}, {transform_indices = @transform_15, window_bounds = array<i64: 1, 1, 64>}, {transform_indices = @transform_16, window_bounds = array<i64: 1, 64, 32>}, {transform_indices = @transform_17, window_bounds = array<i64: 1, 1, 32>}, {transform_indices = @transform_18, window_bounds = array<i64: 1, 1, 32>}, {transform_indices = @transform_19, window_bounds = array<i64: 1, 1, 32>}, {transform_indices = @transform_20, window_bounds = array<i64: 1, 2>}, {transform_indices = @transform_21, window_bounds = array<i64: 1, 2>}, {transform_indices = @transform_22, window_bounds = array<i64: 1, 2>}]} {
    %c0_i32 = arith.constant 0 : i32
    %0 = arith.cmpi eq, %arg1, %c0_i32 : i32
    %1 = arith.extui %0 : i1 to i32
    %c0_i32_0 = arith.constant 0 : i32
    %2 = arith.cmpi ne, %1, %c0_i32_0 : i32
    scf.if %2 {
      %c0_81 = arith.constant 0 : index
      %c0_82 = arith.constant 0 : index
      %c0_83 = arith.constant 0 : index
      %c0_84 = arith.constant 0 : index
      %147 = vector.load %arg2[%c0_81, %c0_82, %c0_83, %c0_84] : memref<2x2x8x32xbf16, #tpu.memory_space<vmem>>, vector<2x2x8x32xbf16>
      %148 = arith.extf %147 : vector<2x2x8x32xbf16> to vector<2x2x8x32xf32>
      %149 = vector.shape_cast %148 : vector<2x2x8x32xf32> to vector<4x8x32xf32>
      %c0_85 = arith.constant 0 : index
      %c0_86 = arith.constant 0 : index
      %150 = vector.load %arg4[%c0_85, %c0_86] : memref<1x32xf32, #tpu.memory_space<vmem>>, vector<1x32xf32>
      %c0_87 = arith.constant 0 : index
      %c0_88 = arith.constant 0 : index
      %151 = vector.load %arg5[%c0_87, %c0_88] : memref<1x32xf32, #tpu.memory_space<vmem>>, vector<1x32xf32>
      %cst_89 = arith.constant dense<0.000000e+00> : vector<4x8xf32>
      %152 = vector.multi_reduction <add>, %149, %cst_89 [2] : vector<4x8x32xf32> to vector<4x8xf32>
      %153 = vector.shape_cast %152 : vector<4x8xf32> to vector<4x8x1xf32>
      %cst_90 = arith.constant 3.200000e+01 : f32
      %154 = vector.broadcast %cst_90 : f32 to vector<4x8x1xf32>
      %155 = arith.divf %153, %154 : vector<4x8x1xf32>
      %156 = vector.broadcast %155 : vector<4x8x1xf32> to vector<4x8x32xf32>
      %157 = arith.subf %149, %156 : vector<4x8x32xf32>
      %158 = arith.mulf %157, %157 : vector<4x8x32xf32>
      %cst_91 = arith.constant dense<0.000000e+00> : vector<4x8xf32>
      %159 = vector.multi_reduction <add>, %158, %cst_91 [2] : vector<4x8x32xf32> to vector<4x8xf32>
      %160 = vector.shape_cast %159 : vector<4x8xf32> to vector<4x8x1xf32>
      %cst_92 = arith.constant 3.200000e+01 : f32
      %161 = vector.broadcast %cst_92 : f32 to vector<4x8x1xf32>
      %162 = arith.divf %160, %161 : vector<4x8x1xf32>
      %cst_93 = arith.constant 9.99999996E-13 : f32
      %163 = vector.broadcast %cst_93 : f32 to vector<4x8x1xf32>
      %164 = arith.addf %162, %163 : vector<4x8x1xf32>
      %165 = math.rsqrt %164 : vector<4x8x1xf32>
      %166 = vector.broadcast %165 : vector<4x8x1xf32> to vector<4x8x32xf32>
      %167 = arith.mulf %157, %166 : vector<4x8x32xf32>
      %168 = vector.shape_cast %150 : vector<1x32xf32> to vector<1x1x32xf32>
      %169 = vector.broadcast %168 : vector<1x1x32xf32> to vector<4x8x32xf32>
      %170 = arith.mulf %167, %169 : vector<4x8x32xf32>
      %171 = vector.shape_cast %151 : vector<1x32xf32> to vector<1x1x32xf32>
      %172 = vector.broadcast %171 : vector<1x1x32xf32> to vector<4x8x32xf32>
      %173 = arith.addf %170, %172 : vector<4x8x32xf32>
      %c0_94 = arith.constant 0 : index
      %c0_95 = arith.constant 0 : index
      %c0_96 = arith.constant 0 : index
      %174 = vector.load %arg25[%c0_94, %c0_95, %c0_96] : memref<4x8x32xf32, #tpu.memory_space<vmem>>, vector<4x8x32xf32>
      tpu.vector_store %arg25[%c0_94, %c0_95, %c0_96], %173 {strides = array<i32>} : memref<4x8x32xf32, #tpu.memory_space<vmem>>, vector<4x8x32xf32>,
      %c0_97 = arith.constant 0 : index
      %c0_98 = arith.constant 0 : index
      %c0_99 = arith.constant 0 : index
      %175 = vector.load %arg3[%c0_97, %c0_98, %c0_99] : memref<2x2x8xf32, #tpu.memory_space<vmem>>, vector<2x2x8xf32>
      %176 = vector.shape_cast %175 : vector<2x2x8xf32> to vector<4x8xf32>
      %cst_100 = arith.constant 1.000000e+00 : f32
      %177 = vector.broadcast %cst_100 : f32 to vector<4x8xf32>
      %178 = arith.subf %177, %176 : vector<4x8xf32>
      %cst_101 = arith.constant -1.000000e+09 : f32
      %179 = vector.broadcast %cst_101 : f32 to vector<4x8xf32>
      %180 = arith.mulf %178, %179 : vector<4x8xf32>
      %c0_102 = arith.constant 0 : index
      %c0_103 = arith.constant 0 : index
      %181 = vector.load %arg26[%c0_102, %c0_103] : memref<4x8xf32, #tpu.memory_space<vmem>>, vector<4x8xf32>
      tpu.vector_store %arg26[%c0_102, %c0_103], %180 {strides = array<i32>} : memref<4x8xf32, #tpu.memory_space<vmem>>, vector<4x8xf32>,
    } else {
    }
    %c0 = arith.constant 0 : index
    %c0_1 = arith.constant 0 : index
    %c0_2 = arith.constant 0 : index
    %3 = vector.load %arg25[%c0, %c0_1, %c0_2] : memref<4x8x32xf32, #tpu.memory_space<vmem>>, vector<4x8x32xf32>
    %c0_3 = arith.constant 0 : index
    %c0_4 = arith.constant 0 : index
    %4 = vector.load %arg26[%c0_3, %c0_4] : memref<4x8xf32, #tpu.memory_space<vmem>>, vector<4x8xf32>
    %5 = vector.shape_cast %4 : vector<4x8xf32> to vector<4x1x8xf32>
    %6 = vector.shape_cast %3 : vector<4x8x32xf32> to vector<32x32xf32>
    %c0_5 = arith.constant 0 : index
    %c0_6 = arith.constant 0 : index
    %c0_7 = arith.constant 0 : index
    %7 = vector.load %arg6[%c0_5, %c0_6, %c0_7] : memref<1x32x32xbf16, #tpu.memory_space<vmem>>, vector<1x32x32xbf16>
    %8 = vector.shape_cast %7 : vector<1x32x32xbf16> to vector<32x32xbf16>
    %c0_8 = arith.constant 0 : index
    %c0_9 = arith.constant 0 : index
    %c0_10 = arith.constant 0 : index
    %9 = vector.load %arg7[%c0_8, %c0_9, %c0_10] : memref<1x1x32xf32, #tpu.memory_space<vmem>>, vector<1x1x32xf32>
    %10 = vector.shape_cast %9 : vector<1x1x32xf32> to vector<1x32xf32>
    %11 = arith.truncf %6 : vector<32x32xf32> to vector<32x32xbf16>
    %cst = arith.constant dense<0.000000e+00> : vector<32x32xf32>
    %12 = tpu.matmul %11, %8, %cst {dimension_numbers = #tpu.dot_dimension_numbers<[1], [0], [0], [1], [0, 0, 1, 1], [], []>} : vector<32x32xbf16>, vector<32x32xbf16>, vector<32x32xf32> -> vector<32x32xf32>
    %13 = vector.broadcast %10 : vector<1x32xf32> to vector<32x32xf32>
    %14 = arith.addf %12, %13 : vector<32x32xf32>
    %15 = vector.shape_cast %14 : vector<32x32xf32> to vector<4x8x32xf32>
    %c0_11 = arith.constant 0 : index
    %c0_12 = arith.constant 0 : index
    %c0_13 = arith.constant 0 : index
    %16 = vector.load %arg8[%c0_11, %c0_12, %c0_13] : memref<1x32x32xbf16, #tpu.memory_space<vmem>>, vector<1x32x32xbf16>
    %17 = vector.shape_cast %16 : vector<1x32x32xbf16> to vector<32x32xbf16>
    %c0_14 = arith.constant 0 : index
    %c0_15 = arith.constant 0 : index
    %c0_16 = arith.constant 0 : index
    %18 = vector.load %arg9[%c0_14, %c0_15, %c0_16] : memref<1x1x32xf32, #tpu.memory_space<vmem>>, vector<1x1x32xf32>
    %19 = vector.shape_cast %18 : vector<1x1x32xf32> to vector<1x32xf32>
    %20 = arith.truncf %6 : vector<32x32xf32> to vector<32x32xbf16>
    %cst_17 = arith.constant dense<0.000000e+00> : vector<32x32xf32>
    %21 = tpu.matmul %20, %17, %cst_17 {dimension_numbers = #tpu.dot_dimension_numbers<[1], [0], [0], [1], [0, 0, 1, 1], [], []>} : vector<32x32xbf16>, vector<32x32xbf16>, vector<32x32xf32> -> vector<32x32xf32>
    %22 = vector.broadcast %19 : vector<1x32xf32> to vector<32x32xf32>
    %23 = arith.addf %21, %22 : vector<32x32xf32>
    %24 = vector.shape_cast %23 : vector<32x32xf32> to vector<4x8x32xf32>
    %c0_18 = arith.constant 0 : index
    %c0_19 = arith.constant 0 : index
    %c0_20 = arith.constant 0 : index
    %25 = vector.load %arg10[%c0_18, %c0_19, %c0_20] : memref<1x32x32xbf16, #tpu.memory_space<vmem>>, vector<1x32x32xbf16>
    %26 = vector.shape_cast %25 : vector<1x32x32xbf16> to vector<32x32xbf16>
    %c0_21 = arith.constant 0 : index
    %c0_22 = arith.constant 0 : index
    %c0_23 = arith.constant 0 : index
    %27 = vector.load %arg11[%c0_21, %c0_22, %c0_23] : memref<1x1x32xf32, #tpu.memory_space<vmem>>, vector<1x1x32xf32>
    %28 = vector.shape_cast %27 : vector<1x1x32xf32> to vector<1x32xf32>
    %29 = arith.truncf %6 : vector<32x32xf32> to vector<32x32xbf16>
    %cst_24 = arith.constant dense<0.000000e+00> : vector<32x32xf32>
    %30 = tpu.matmul %29, %26, %cst_24 {dimension_numbers = #tpu.dot_dimension_numbers<[1], [0], [0], [1], [0, 0, 1, 1], [], []>} : vector<32x32xbf16>, vector<32x32xbf16>, vector<32x32xf32> -> vector<32x32xf32>
    %31 = vector.broadcast %28 : vector<1x32xf32> to vector<32x32xf32>
    %32 = arith.addf %30, %31 : vector<32x32xf32>
    %33 = vector.shape_cast %32 : vector<32x32xf32> to vector<4x8x32xf32>
    %34 = arith.truncf %15 : vector<4x8x32xf32> to vector<4x8x32xbf16>
    %35 = arith.truncf %24 : vector<4x8x32xf32> to vector<4x8x32xbf16>
    "tpu.trace_start"() <{level = 10 : i32, message = "bqd,bkd->bqk"}> : () -> ()
    %cst_25 = arith.constant dense<0.000000e+00> : vector<4x8x8xf32>
    %36 = tpu.matmul %34, %35, %cst_25 {dimension_numbers = #tpu.dot_dimension_numbers<[2], [2], [1], [1], [0, 0, 0, 1, 1, 1], [0], [0]>} : vector<4x8x32xbf16>, vector<4x8x32xbf16>, vector<4x8x8xf32> -> vector<4x8x8xf32>
    "tpu.trace_stop"() : () -> ()
    %cst_26 = arith.constant 0.176776692 : f32
    %37 = vector.broadcast %cst_26 : f32 to vector<4x8x8xf32>
    %38 = arith.mulf %36, %37 : vector<4x8x8xf32>
    %39 = vector.broadcast %5 : vector<4x1x8xf32> to vector<4x8x8xf32>
    %40 = arith.addf %38, %39 : vector<4x8x8xf32>
    %cst_27 = arith.constant dense<0xFF800000> : vector<4x8xf32>
    %41 = vector.multi_reduction <maximumf>, %40, %cst_27 [2] : vector<4x8x8xf32> to vector<4x8xf32>
    %42 = vector.shape_cast %41 : vector<4x8xf32> to vector<4x8x1xf32>
    %43 = vector.broadcast %42 : vector<4x8x1xf32> to vector<4x8x8xf32>
    %44 = arith.subf %40, %43 : vector<4x8x8xf32>
    %45 = math.exp %44 : vector<4x8x8xf32>
    %cst_28 = arith.constant dense<0.000000e+00> : vector<4x8xf32>
    %46 = vector.multi_reduction <add>, %45, %cst_28 [2] : vector<4x8x8xf32> to vector<4x8xf32>
    %47 = vector.shape_cast %46 : vector<4x8xf32> to vector<4x8x1xf32>
    %48 = tpu.reciprocal %47 {approx = true} : vector<4x8x1xf32> -> vector<4x8x1xf32>
    %49 = vector.broadcast %48 : vector<4x8x1xf32> to vector<4x8x8xf32>
    %50 = arith.mulf %45, %49 : vector<4x8x8xf32>
    %51 = arith.truncf %50 : vector<4x8x8xf32> to vector<4x8x8xbf16>
    %52 = arith.truncf %33 : vector<4x8x32xf32> to vector<4x8x32xbf16>
    "tpu.trace_start"() <{level = 10 : i32, message = "bqk,bkd->bqd"}> : () -> ()
    %cst_29 = arith.constant dense<0.000000e+00> : vector<4x8x32xf32>
    %53 = tpu.matmul %51, %52, %cst_29 {dimension_numbers = #tpu.dot_dimension_numbers<[2], [1], [1], [2], [0, 0, 0, 1, 1, 2], [0], [0]>} : vector<4x8x8xbf16>, vector<4x8x32xbf16>, vector<4x8x32xf32> -> vector<4x8x32xf32>
    "tpu.trace_stop"() : () -> ()
    %54 = vector.shape_cast %53 : vector<4x8x32xf32> to vector<32x32xf32>
    %c0_30 = arith.constant 0 : index
    %c0_31 = arith.constant 0 : index
    %c0_32 = arith.constant 0 : index
    %55 = vector.load %arg12[%c0_30, %c0_31, %c0_32] : memref<1x32x32xbf16, #tpu.memory_space<vmem>>, vector<1x32x32xbf16>
    %56 = vector.shape_cast %55 : vector<1x32x32xbf16> to vector<32x32xbf16>
    %c0_33 = arith.constant 0 : index
    %c0_34 = arith.constant 0 : index
    %c0_35 = arith.constant 0 : index
    %57 = vector.load %arg13[%c0_33, %c0_34, %c0_35] : memref<1x1x32xf32, #tpu.memory_space<vmem>>, vector<1x1x32xf32>
    %58 = vector.shape_cast %57 : vector<1x1x32xf32> to vector<1x32xf32>
    %59 = arith.truncf %54 : vector<32x32xf32> to vector<32x32xbf16>
    %cst_36 = arith.constant dense<0.000000e+00> : vector<32x32xf32>
    %60 = tpu.matmul %59, %56, %cst_36 {dimension_numbers = #tpu.dot_dimension_numbers<[1], [0], [0], [1], [0, 0, 1, 1], [], []>} : vector<32x32xbf16>, vector<32x32xbf16>, vector<32x32xf32> -> vector<32x32xf32>
    %61 = vector.broadcast %58 : vector<1x32xf32> to vector<32x32xf32>
    %62 = arith.addf %60, %61 : vector<32x32xf32>
    %63 = arith.addf %6, %62 : vector<32x32xf32>
    %c0_37 = arith.constant 0 : index
    %c0_38 = arith.constant 0 : index
    %c0_39 = arith.constant 0 : index
    %64 = vector.load %arg14[%c0_37, %c0_38, %c0_39] : memref<1x1x32xf32, #tpu.memory_space<vmem>>, vector<1x1x32xf32>
    %65 = vector.shape_cast %64 : vector<1x1x32xf32> to vector<1x32xf32>
    %c0_40 = arith.constant 0 : index
    %c0_41 = arith.constant 0 : index
    %c0_42 = arith.constant 0 : index
    %66 = vector.load %arg15[%c0_40, %c0_41, %c0_42] : memref<1x1x32xf32, #tpu.memory_space<vmem>>, vector<1x1x32xf32>
    %67 = vector.shape_cast %66 : vector<1x1x32xf32> to vector<1x32xf32>
    %cst_43 = arith.constant dense<0.000000e+00> : vector<32xf32>
    %68 = vector.multi_reduction <add>, %63, %cst_43 [1] : vector<32x32xf32> to vector<32xf32>
    %69 = vector.shape_cast %68 : vector<32xf32> to vector<32x1xf32>
    %cst_44 = arith.constant 3.200000e+01 : f32
    %70 = vector.broadcast %cst_44 : f32 to vector<32x1xf32>
    %71 = arith.divf %69, %70 : vector<32x1xf32>
    %72 = vector.broadcast %71 : vector<32x1xf32> to vector<32x32xf32>
    %73 = arith.subf %63, %72 : vector<32x32xf32>
    %74 = arith.mulf %73, %73 : vector<32x32xf32>
    %cst_45 = arith.constant dense<0.000000e+00> : vector<32xf32>
    %75 = vector.multi_reduction <add>, %74, %cst_45 [1] : vector<32x32xf32> to vector<32xf32>
    %76 = vector.shape_cast %75 : vector<32xf32> to vector<32x1xf32>
    %cst_46 = arith.constant 3.200000e+01 : f32
    %77 = vector.broadcast %cst_46 : f32 to vector<32x1xf32>
    %78 = arith.divf %76, %77 : vector<32x1xf32>
    %cst_47 = arith.constant 9.99999996E-13 : f32
    %79 = vector.broadcast %cst_47 : f32 to vector<32x1xf32>
    %80 = arith.addf %78, %79 : vector<32x1xf32>
    %81 = math.rsqrt %80 : vector<32x1xf32>
    %82 = vector.broadcast %81 : vector<32x1xf32> to vector<32x32xf32>
    %83 = arith.mulf %73, %82 : vector<32x32xf32>
    %84 = vector.broadcast %65 : vector<1x32xf32> to vector<32x32xf32>
    %85 = arith.mulf %83, %84 : vector<32x32xf32>
    %86 = vector.broadcast %67 : vector<1x32xf32> to vector<32x32xf32>
    %87 = arith.addf %85, %86 : vector<32x32xf32>
    %c0_48 = arith.constant 0 : index
    %c0_49 = arith.constant 0 : index
    %c0_50 = arith.constant 0 : index
    %88 = vector.load %arg16[%c0_48, %c0_49, %c0_50] : memref<1x32x64xbf16, #tpu.memory_space<vmem>>, vector<1x32x64xbf16>
    %89 = vector.shape_cast %88 : vector<1x32x64xbf16> to vector<32x64xbf16>
    %c0_51 = arith.constant 0 : index
    %c0_52 = arith.constant 0 : index
    %c0_53 = arith.constant 0 : index
    %90 = vector.load %arg17[%c0_51, %c0_52, %c0_53] : memref<1x1x64xf32, #tpu.memory_space<vmem>>, vector<1x1x64xf32>
    %91 = vector.shape_cast %90 : vector<1x1x64xf32> to vector<1x64xf32>
    %92 = arith.truncf %87 : vector<32x32xf32> to vector<32x32xbf16>
    %cst_54 = arith.constant dense<0.000000e+00> : vector<32x64xf32>
    %93 = tpu.matmul %92, %89, %cst_54 {dimension_numbers = #tpu.dot_dimension_numbers<[1], [0], [0], [1], [0, 0, 1, 1], [], []>} : vector<32x32xbf16>, vector<32x64xbf16>, vector<32x64xf32> -> vector<32x64xf32>
    %94 = vector.broadcast %91 : vector<1x64xf32> to vector<32x64xf32>
    %95 = arith.addf %93, %94 : vector<32x64xf32>
    %cst_55 = arith.constant 5.000000e-01 : f32
    %96 = vector.broadcast %cst_55 : f32 to vector<32x64xf32>
    %97 = arith.mulf %96, %95 : vector<32x64xf32>
    %cst_56 = arith.constant 4.471500e-02 : f32
    %98 = vector.broadcast %cst_56 : f32 to vector<32x64xf32>
    %99 = arith.mulf %98, %95 : vector<32x64xf32>
    %100 = arith.mulf %99, %95 : vector<32x64xf32>
    %101 = arith.mulf %100, %95 : vector<32x64xf32>
    %102 = arith.addf %95, %101 : vector<32x64xf32>
    %cst_57 = arith.constant 0.797884583 : f32
    %103 = vector.broadcast %cst_57 : f32 to vector<32x64xf32>
    %104 = arith.mulf %103, %102 : vector<32x64xf32>
    %105 = math.tanh %104 : vector<32x64xf32>
    %cst_58 = arith.constant 1.000000e+00 : f32
    %106 = vector.broadcast %cst_58 : f32 to vector<32x64xf32>
    %107 = arith.addf %106, %105 : vector<32x64xf32>
    %108 = arith.mulf %97, %107 : vector<32x64xf32>
    %c0_59 = arith.constant 0 : index
    %c0_60 = arith.constant 0 : index
    %c0_61 = arith.constant 0 : index
    %109 = vector.load %arg18[%c0_59, %c0_60, %c0_61] : memref<1x64x32xbf16, #tpu.memory_space<vmem>>, vector<1x64x32xbf16>
    %110 = vector.shape_cast %109 : vector<1x64x32xbf16> to vector<64x32xbf16>
    %c0_62 = arith.constant 0 : index
    %c0_63 = arith.constant 0 : index
    %c0_64 = arith.constant 0 : index
    %111 = vector.load %arg19[%c0_62, %c0_63, %c0_64] : memref<1x1x32xf32, #tpu.memory_space<vmem>>, vector<1x1x32xf32>
    %112 = vector.shape_cast %111 : vector<1x1x32xf32> to vector<1x32xf32>
    %113 = arith.truncf %108 : vector<32x64xf32> to vector<32x64xbf16>
    %cst_65 = arith.constant dense<0.000000e+00> : vector<32x32xf32>
    %114 = tpu.matmul %113, %110, %cst_65 {dimension_numbers = #tpu.dot_dimension_numbers<[1], [0], [0], [1], [0, 0, 1, 1], [], []>} : vector<32x64xbf16>, vector<64x32xbf16>, vector<32x32xf32> -> vector<32x32xf32>
    %115 = vector.broadcast %112 : vector<1x32xf32> to vector<32x32xf32>
    %116 = arith.addf %114, %115 : vector<32x32xf32>
    %117 = arith.addf %87, %116 : vector<32x32xf32>
    %c0_66 = arith.constant 0 : index
    %c0_67 = arith.constant 0 : index
    %c0_68 = arith.constant 0 : index
    %118 = vector.load %arg20[%c0_66, %c0_67, %c0_68] : memref<1x1x32xf32, #tpu.memory_space<vmem>>, vector<1x1x32xf32>
    %119 = vector.shape_cast %118 : vector<1x1x32xf32> to vector<1x32xf32>
    %c0_69 = arith.constant 0 : index
    %c0_70 = arith.constant 0 : index
    %c0_71 = arith.constant 0 : index
    %120 = vector.load %arg21[%c0_69, %c0_70, %c0_71] : memref<1x1x32xf32, #tpu.memory_space<vmem>>, vector<1x1x32xf32>
    %121 = vector.shape_cast %120 : vector<1x1x32xf32> to vector<1x32xf32>
    %cst_72 = arith.constant dense<0.000000e+00> : vector<32xf32>
    %122 = vector.multi_reduction <add>, %117, %cst_72 [1] : vector<32x32xf32> to vector<32xf32>
    %123 = vector.shape_cast %122 : vector<32xf32> to vector<32x1xf32>
    %cst_73 = arith.constant 3.200000e+01 : f32
    %124 = vector.broadcast %cst_73 : f32 to vector<32x1xf32>
    %125 = arith.divf %123, %124 : vector<32x1xf32>
    %126 = vector.broadcast %125 : vector<32x1xf32> to vector<32x32xf32>
    %127 = arith.subf %117, %126 : vector<32x32xf32>
    %128 = arith.mulf %127, %127 : vector<32x32xf32>
    %cst_74 = arith.constant dense<0.000000e+00> : vector<32xf32>
    %129 = vector.multi_reduction <add>, %128, %cst_74 [1] : vector<32x32xf32> to vector<32xf32>
    %130 = vector.shape_cast %129 : vector<32xf32> to vector<32x1xf32>
    %cst_75 = arith.constant 3.200000e+01 : f32
    %131 = vector.broadcast %cst_75 : f32 to vector<32x1xf32>
    %132 = arith.divf %130, %131 : vector<32x1xf32>
    %cst_76 = arith.constant 9.99999996E-13 : f32
    %133 = vector.broadcast %cst_76 : f32 to vector<32x1xf32>
    %134 = arith.addf %132, %133 : vector<32x1xf32>
    %135 = math.rsqrt %134 : vector<32x1xf32>
    %136 = vector.broadcast %135 : vector<32x1xf32> to vector<32x32xf32>
    %137 = arith.mulf %127, %136 : vector<32x32xf32>
    %138 = vector.broadcast %119 : vector<1x32xf32> to vector<32x32xf32>
    %139 = arith.mulf %137, %138 : vector<32x32xf32>
    %140 = vector.broadcast %121 : vector<1x32xf32> to vector<32x32xf32>
    %141 = arith.addf %139, %140 : vector<32x32xf32>
    %142 = vector.shape_cast %141 : vector<32x32xf32> to vector<4x8x32xf32>
    %c0_77 = arith.constant 0 : index
    %c0_78 = arith.constant 0 : index
    %c0_79 = arith.constant 0 : index
    %143 = vector.load %arg25[%c0_77, %c0_78, %c0_79] : memref<4x8x32xf32, #tpu.memory_space<vmem>>, vector<4x8x32xf32>
    tpu.vector_store %arg25[%c0_77, %c0_78, %c0_79], %142 {strides = array<i32>} : memref<4x8x32xf32, #tpu.memory_space<vmem>>, vector<4x8x32xf32>,
    %c1_i32 = arith.constant 1 : i32
    %144 = arith.cmpi eq, %arg1, %c1_i32 : i32
    %145 = arith.extui %144 : i1 to i32
    %c0_i32_80 = arith.constant 0 : i32
    %146 = arith.cmpi ne, %145, %c0_i32_80 : i32
    scf.if %146 {
      %cst_81 = arith.constant dense<0.000000e+00> : vector<4x32xf32>
      %147 = vector.multi_reduction <add>, %142, %cst_81 [1] : vector<4x8x32xf32> to vector<4x32xf32>
      %cst_82 = arith.constant 1.250000e-01 : f32
      %148 = vector.broadcast %cst_82 : f32 to vector<4x32xf32>
      %149 = arith.mulf %147, %148 : vector<4x32xf32>
      %150 = vector.extract_strided_slice %149 {offsets = [0, 0], sizes = [2, 32], strides = [1, 1]} : vector<4x32xf32> to vector<2x32xf32>
      %151 = vector.extract_strided_slice %149 {offsets = [2, 0], sizes = [2, 32], strides = [1, 1]} : vector<4x32xf32> to vector<2x32xf32>
      "tpu.trace_start"() <{level = 10 : i32, message = "ih,jh->ij"}> : () -> ()
      %cst_83 = arith.constant dense<0.000000e+00> : vector<2x2xf32>
      %152 = tpu.matmul %150, %151, %cst_83 {dimension_numbers = #tpu.dot_dimension_numbers<[1], [1], [0], [0], [0, 0, 1, 0], [], []>} : vector<2x32xf32>, vector<2x32xf32>, vector<2x2xf32> -> vector<2x2xf32>
      "tpu.trace_stop"() : () -> ()
      %153 = tpu.iota {dimensions = array<i32: 0>} : vector<2x2xi32>
      %154 = tpu.iota {dimensions = array<i32: 1>} : vector<2x2xi32>
      %155 = arith.cmpi eq, %153, %154 : vector<2x2xi32>
      %cst_84 = arith.constant 0.000000e+00 : f32
      %156 = vector.broadcast %cst_84 : f32 to vector<2x2xf32>
      %157 = arith.select %155, %152, %156 : vector<2x2xi1>, vector<2x2xf32>
      %cst_85 = arith.constant dense<0.000000e+00> : vector<2xf32>
      %158 = vector.multi_reduction <add>, %157, %cst_85 [0] : vector<2x2xf32> to vector<2xf32>
      %159 = vector.shape_cast %158 : vector<2xf32> to vector<1x2xf32>
      %c0_86 = arith.constant 0 : index
      %c0_87 = arith.constant 0 : index
      %160 = vector.load %arg23[%c0_86, %c0_87] : memref<1x2xf32, #tpu.memory_space<vmem>>, vector<1x2xf32>
      tpu.vector_store %arg23[%c0_86, %c0_87], %159 {strides = array<i32>} : memref<1x2xf32, #tpu.memory_space<vmem>>, vector<1x2xf32>,
      %c0_88 = arith.constant 0 : index
      %c0_89 = arith.constant 0 : index
      %161 = vector.load %arg22[%c0_88, %c0_89] : memref<1x2xf32, #tpu.memory_space<vmem>>, vector<1x2xf32>
      %cst_90 = arith.constant 0.000000e+00 : f32
      %162 = vector.broadcast %cst_90 : f32 to vector<1x2xf32>
      %163 = arith.maximumf %159, %162 : vector<1x2xf32>
      %164 = arith.mulf %159, %161 : vector<1x2xf32>
      %165 = arith.subf %163, %164 : vector<1x2xf32>
      %166 = math.absf %159 : vector<1x2xf32>
      %cst_91 = arith.constant 0.000000e+00 : f32
      %167 = vector.broadcast %cst_91 : f32 to vector<1x2xf32>
      %168 = arith.subf %167, %166 : vector<1x2xf32>
      %169 = math.exp %168 : vector<1x2xf32>
      %cst_92 = arith.constant 1.000000e+00 : f32
      %170 = vector.broadcast %cst_92 : f32 to vector<1x2xf32>
      %171 = arith.addf %170, %169 : vector<1x2xf32>
      %172 = math.log %171 : vector<1x2xf32>
      %173 = arith.addf %165, %172 : vector<1x2xf32>
      %c0_93 = arith.constant 0 : index
      %c0_94 = arith.constant 0 : index
      %174 = vector.load %arg24[%c0_93, %c0_94] : memref<1x2xf32, #tpu.memory_space<vmem>>, vector<1x2xf32>
      tpu.vector_store %arg24[%c0_93, %c0_94], %173 {strides = array<i32>} : memref<1x2xf32, #tpu.memory_space<vmem>>, vector<1x2xf32>,
    } else {
    }
    return
  }
  func.func @transform_0(%arg0: i32, %arg1: i32) -> (i32, i32, i32, i32) {
    %c0_i32 = arith.constant 0 : i32
    %c0_i32_0 = arith.constant 0 : i32
    %c0_i32_1 = arith.constant 0 : i32
    %c0_i32_2 = arith.constant 0 : i32
    return %c0_i32, %arg0, %c0_i32_0, %c0_i32_1 : i32, i32, i32, i32
  }
  func.func @transform_1(%arg0: i32, %arg1: i32) -> (i32, i32, i32) {
    %c0_i32 = arith.constant 0 : i32
    %c0_i32_0 = arith.constant 0 : i32
    %c0_i32_1 = arith.constant 0 : i32
    return %c0_i32, %arg0, %c0_i32_0 : i32, i32, i32
  }
  func.func @transform_2(%arg0: i32, %arg1: i32) -> (i32, i32) {
    %c0_i32 = arith.constant 0 : i32
    %c0_i32_0 = arith.constant 0 : i32
    %c0_i32_1 = arith.constant 0 : i32
    return %c0_i32, %c0_i32_0 : i32, i32
  }
  func.func @transform_3(%arg0: i32, %arg1: i32) -> (i32, i32) {
    %c0_i32 = arith.constant 0 : i32
    %c0_i32_0 = arith.constant 0 : i32
    %c0_i32_1 = arith.constant 0 : i32
    return %c0_i32, %c0_i32_0 : i32, i32
  }
  func.func @transform_4(%arg0: i32, %arg1: i32) -> (i32, i32, i32) {
    %c0_i32 = arith.constant 0 : i32
    %c0_i32_0 = arith.constant 0 : i32
    %c0_i32_1 = arith.constant 0 : i32
    return %arg1, %c0_i32, %c0_i32_0 : i32, i32, i32
  }
  func.func @transform_5(%arg0: i32, %arg1: i32) -> (i32, i32, i32) {
    %c0_i32 = arith.constant 0 : i32
    %c0_i32_0 = arith.constant 0 : i32
    %c0_i32_1 = arith.constant 0 : i32
    return %arg1, %c0_i32, %c0_i32_0 : i32, i32, i32
  }
  func.func @transform_6(%arg0: i32, %arg1: i32) -> (i32, i32, i32) {
    %c0_i32 = arith.constant 0 : i32
    %c0_i32_0 = arith.constant 0 : i32
    %c0_i32_1 = arith.constant 0 : i32
    return %arg1, %c0_i32, %c0_i32_0 : i32, i32, i32
  }
  func.func @transform_7(%arg0: i32, %arg1: i32) -> (i32, i32, i32) {
    %c0_i32 = arith.constant 0 : i32
    %c0_i32_0 = arith.constant 0 : i32
    %c0_i32_1 = arith.constant 0 : i32
    return %arg1, %c0_i32, %c0_i32_0 : i32, i32, i32
  }
  func.func @transform_8(%arg0: i32, %arg1: i32) -> (i32, i32, i32) {
    %c0_i32 = arith.constant 0 : i32
    %c0_i32_0 = arith.constant 0 : i32
    %c0_i32_1 = arith.constant 0 : i32
    return %arg1, %c0_i32, %c0_i32_0 : i32, i32, i32
  }
  func.func @transform_9(%arg0: i32, %arg1: i32) -> (i32, i32, i32) {
    %c0_i32 = arith.constant 0 : i32
    %c0_i32_0 = arith.constant 0 : i32
    %c0_i32_1 = arith.constant 0 : i32
    return %arg1, %c0_i32, %c0_i32_0 : i32, i32, i32
  }
  func.func @transform_10(%arg0: i32, %arg1: i32) -> (i32, i32, i32) {
    %c0_i32 = arith.constant 0 : i32
    %c0_i32_0 = arith.constant 0 : i32
    %c0_i32_1 = arith.constant 0 : i32
    return %arg1, %c0_i32, %c0_i32_0 : i32, i32, i32
  }
  func.func @transform_11(%arg0: i32, %arg1: i32) -> (i32, i32, i32) {
    %c0_i32 = arith.constant 0 : i32
    %c0_i32_0 = arith.constant 0 : i32
    %c0_i32_1 = arith.constant 0 : i32
    return %arg1, %c0_i32, %c0_i32_0 : i32, i32, i32
  }
  func.func @transform_12(%arg0: i32, %arg1: i32) -> (i32, i32, i32) {
    %c0_i32 = arith.constant 0 : i32
    %c0_i32_0 = arith.constant 0 : i32
    %c0_i32_1 = arith.constant 0 : i32
    return %arg1, %c0_i32, %c0_i32_0 : i32, i32, i32
  }
  func.func @transform_13(%arg0: i32, %arg1: i32) -> (i32, i32, i32) {
    %c0_i32 = arith.constant 0 : i32
    %c0_i32_0 = arith.constant 0 : i32
    %c0_i32_1 = arith.constant 0 : i32
    return %arg1, %c0_i32, %c0_i32_0 : i32, i32, i32
  }
  func.func @transform_14(%arg0: i32, %arg1: i32) -> (i32, i32, i32) {
    %c0_i32 = arith.constant 0 : i32
    %c0_i32_0 = arith.constant 0 : i32
    %c0_i32_1 = arith.constant 0 : i32
    return %arg1, %c0_i32, %c0_i32_0 : i32, i32, i32
  }
  func.func @transform_15(%arg0: i32, %arg1: i32) -> (i32, i32, i32) {
    %c0_i32 = arith.constant 0 : i32
    %c0_i32_0 = arith.constant 0 : i32
    %c0_i32_1 = arith.constant 0 : i32
    return %arg1, %c0_i32, %c0_i32_0 : i32, i32, i32
  }
  func.func @transform_16(%arg0: i32, %arg1: i32) -> (i32, i32, i32) {
    %c0_i32 = arith.constant 0 : i32
    %c0_i32_0 = arith.constant 0 : i32
    %c0_i32_1 = arith.constant 0 : i32
    return %arg1, %c0_i32, %c0_i32_0 : i32, i32, i32
  }
  func.func @transform_17(%arg0: i32, %arg1: i32) -> (i32, i32, i32) {
    %c0_i32 = arith.constant 0 : i32
    %c0_i32_0 = arith.constant 0 : i32
    %c0_i32_1 = arith.constant 0 : i32
    return %arg1, %c0_i32, %c0_i32_0 : i32, i32, i32
  }
  func.func @transform_18(%arg0: i32, %arg1: i32) -> (i32, i32, i32) {
    %c0_i32 = arith.constant 0 : i32
    %c0_i32_0 = arith.constant 0 : i32
    %c0_i32_1 = arith.constant 0 : i32
    return %arg1, %c0_i32, %c0_i32_0 : i32, i32, i32
  }
  func.func @transform_19(%arg0: i32, %arg1: i32) -> (i32, i32, i32) {
    %c0_i32 = arith.constant 0 : i32
    %c0_i32_0 = arith.constant 0 : i32
    %c0_i32_1 = arith.constant 0 : i32
    return %arg1, %c0_i32, %c0_i32_0 : i32, i32, i32
  }
  func.func @transform_20(%arg0: i32, %arg1: i32) -> (i32, i32) {
    %c0_i32 = arith.constant 0 : i32
    %c0_i32_0 = arith.constant 0 : i32
    return %c0_i32, %arg0 : i32, i32
  }
  func.func @transform_21(%arg0: i32, %arg1: i32) -> (i32, i32) {
    %c0_i32 = arith.constant 0 : i32
    %c0_i32_0 = arith.constant 0 : i32
    return %c0_i32, %arg0 : i32, i32
  }
  func.func @transform_22(%arg0: i32, %arg1: i32) -> (i32, i32) {
    %c0_i32 = arith.constant 0 : i32
    %c0_i32_0 = arith.constant 0 : i32
    return %c0_i32, %arg0 : i32, i32
  }
}

</mosaic_0001>

<bundles_post_ra>
// kernel: bert_dot_bce_forward.1
= control target key start
LH: loop header
LB: loop body
LE: loop exit
PB: predicated region body
PF: predicated region fallthrough
CT: control target
= control target key end

     0   :  { %s3572_s0 = inlined_call_operand.vmem [shape: bf16[2,2,8,32], index: 0, kind: input, shape index: {}]   ;;  %s3573_s1 = inlined_call_operand.vmem [shape: f32[2,2,8], index: 1, kind: input, shape index: {}]   ;;  %s3574_s2 = inlined_call_operand.vmem [shape: f32[1,32], index: 2, kind: input, shape index: {}]   ;;  %s3575_s3 = inlined_call_operand.vmem [shape: f32[1,32], index: 3, kind: input, shape index: {}]   ;;  %s3576_s4 = inlined_call_operand.vmem [shape: bf16[2,32,32], index: 4, kind: input, shape index: {}]   ;;  %s3577_s5 = inlined_call_operand.vmem [shape: f32[2,1,32], index: 5, kind: input, shape index: {}, may-alias: {5,7,9,11,13,17,19}]   ;;  %s3578_s6 = inlined_call_operand.vmem [shape: bf16[2,32,32], index: 6, kind: input, shape index: {}]   ;;  %s3579_s7 = inlined_call_operand.vmem [shape: f32[2,1,32], index: 7, kind: input, shape index: {}, may-alias: {5,7,9,11,13,17,19}]   ;;  %s3580_s8 = inlined_call_operand.vmem [shape: bf16[2,32,32], index: 8, kind: input, shape index: {}]   ;;  %s3581_s9 = inlined_call_operand.vmem [shape: f32[2,1,32], index: 9, kind: input, shape index: {}, may-alias: {5,7,9,11,13,17,19}]   ;;  %s3582_s10 = inlined_call_operand.vmem [shape: bf16[2,32,32], index: 10, kind: input, shape index: {}]   ;;  %s3583_s11 = inlined_call_operand.vmem [shape: f32[2,1,32], index: 11, kind: input, shape index: {}, may-alias: {5,7,9,11,13,17,19}]   ;;  %s3584_s12 = inlined_call_operand.vmem [shape: f32[2,1,32], index: 12, kind: input, shape index: {}, may-alias: {12,18}]   ;;  %s3585_s13 = inlined_call_operand.vmem [shape: f32[2,1,32], index: 13, kind: input, shape index: {}, may-alias: {5,7,9,11,13,17,19}]   ;;  %s3586_s14 = inlined_call_operand.vmem [shape: bf16[2,32,64], index: 14, kind: input, shape index: {}]   ;;  %s3587_s15 = inlined_call_operand.vmem [shape: f32[2,1,64], index: 15, kind: input, shape index: {}]   ;;  %s3588_s16 = inlined_call_operand.vmem [shape: bf16[2,64,32], index: 16, kind: input, shape index: {}]   ;;  %s3589_s17 = inlined_call_operand.vmem [shape: f32[2,1,32], index: 17, kind: input, shape index: {}, may-alias: {5,7,9,11,13,17,19}]   ;;  %s3590_s18 = inlined_call_operand.vmem [shape: f32[2,1,32], index: 18, kind: input, shape index: {}, may-alias: {12,18}]   ;;  %s3591_s19 = inlined_call_operand.vmem [shape: f32[2,1,32], index: 19, kind: input, shape index: {}, may-alias: {5,7,9,11,13,17,19}]   ;;  %s3592_s20 = inlined_call_operand.vmem [shape: f32[1,2], index: 20, kind: input, shape index: {}]   ;;  %s3593_s21 = inlined_call_operand.hbm [shape: f32[1,2], index: 21, kind: output, shape index: {0}]   ;;  %s3594_s22 = inlined_call_operand.vmem [shape: f32[1,2], index: 22, kind: output, shape index: {1}]  }
   0x1   :  { %3601 = sst [smem:[#allocation11_spill]] %s3572_s0 }
   0x2   :  { %3602 = sst [smem:[#allocation12_spill]] %s3573_s1 }
   0x3   :  { %3603 = sst [smem:[#allocation13_spill]] %s3574_s2 }
   0x4   :  { %3604 = sst [smem:[#allocation14_spill]] %s3575_s3 }
   0x5   :  { %3605 = sst [smem:[#allocation15_spill]] %s3576_s4 }
   0x6   :  { %3606 = sst [smem:[#allocation16_spill]] %s3577_s5 }
   0x7   :  { %3607 = sst [smem:[#allocation17_spill]] %s3578_s6 }
   0x8   :  { %3608 = sst [smem:[#allocation18_spill]] %s3579_s7 }
   0x9   :  { %3609 = sst [smem:[#allocation19_spill]] %s3580_s8 }
   0xa   :  { %3610 = sst [smem:[#allocation20_spill]] %s3582_s10 }
   0xb   :  { %3611 = sst [smem:[#allocation21_spill]] %s3586_s14 }
   0xc   :  { %3612 = sst [smem:[#allocation22_spill]] %s3588_s16 }
   0xd   :  { %3613 = sst [smem:[#allocation23_spill]] %s3591_s19 }
   0xe   :  { %3614 = sst [smem:[#allocation24_spill]] %s3592_s20 }
   0xf   :  { %3615 = sst [smem:[#allocation25_spill]] %s3593_s21 }
  0x10   :  { %3616 = sst [smem:[#allocation26_spill]] %s3594_s22 }
  0x11   :  { %28 = vsyncpa [#allocation5], 0  ;;  %s3205_s3 = smov 0   ;;  %s3207_s28 = smov 0  }
  0x12   :  { %s3209_s29 = smov 0  }
  0x13 LB: > { %3617 = sst [smem:[#allocation7_spill]] %s3073_s3  ;;  %s43_s4 = sadd.s32 1, %s3077_s28  ;;  %s3081_s29 = sphi %s3209_s29, %s34_s29   ;;  %s3077_s28 = sphi %s3207_s28, %s3655_s28   ;;  %s3073_s3 = sphi %s3205_s3, %s3654_s3  }
  0x14   : > { %3618 = sst [smem:[#allocation8_spill]] %s3077_s28  ;;  %p44_p0 = scmp.ge.s32.totalorder %s43_s4, 2 }
  0x15   : > { %3619 = sst [smem:[#allocation9_spill]] %s3081_s29  ;;  %p2693_p1 = scmp.ge.s32.totalorder %s3081_s29, 1 }
  0x16   : > { %p786_p2 = scmp.lt.s32.totalorder %s3081_s29, 3  ;;  %s3657_s4 = smov (%p44_p0, %s43_s4), 0 }
  0x17   : > { %3620 = sst [smem:[#allocation10_spill]] %s3657_s4 }
  0x18   : > { %p787_p3 = pnand %p2693_p1, %p786_p2 }
  0x19   : > { %p923_p4 = scmp.lt.s32.totalorder (!%p787_p3), %s3073_s3, 1  ;;  %s3622_s2 = sld [smem:[#allocation15_spill]] (!%p787_p3) }
  0x1a   : > { %790 = sbr.rel (%p787_p3) target bundleno = 2998 (0xbb6), region = 104  ;;  %s3623_s28 = sld [smem:[#allocation17_spill]] (!%p787_p3) }
  0x1b   : > { %s3625_s8 = sld [smem:[#allocation19_spill]] (!%p787_p3)  ;;  %s3626_s10 = sld [smem:[#allocation20_spill]] (!%p787_p3) }
  0x1c   : > { %s3627_s14 = sld [smem:[#allocation21_spill]] (!%p787_p3)  ;;  %s3628_s16 = sld [smem:[#allocation22_spill]] (!%p787_p3) }
  0x1d   : > { %s3629_s20 = sld [smem:[#allocation23_spill]] (!%p787_p3)  ;;  %s3630_s26 = sld [smem:[#allocation7_spill]] (!%p787_p3) }
  0x21   : > { %s3228_s0 = scalar_select %p923_p4, %s3073_s3, 1 }
  0x23   : > { %s2762_s23 = sshll.u32 %s3228_s0, 4  ;;  %s976_s19 = scalar_lea.vmem %s3589_s17, %s3228_s0 }
  0x24   : > { %s3238_s27 = scalar_lea.vmem %s3622_s2, %s2762_s23  ;;  %s3243_s21 = scalar_lea.vmem %s3623_s28, %s2762_s23 }
  0x25   : > { %s3252_s1 = scalar_lea.vmem %s3625_s8, %s2762_s23  ;;  %s3261_s6 = scalar_lea.vmem %s3626_s10, %s2762_s23 }
  0x26   : > { %s3278_s24 = scalar_lea.vmem %s3627_s14, %s2762_s23  ;;  %s2767_s10 = sshll.u32 %s3228_s0, 5 }
  0x27   : > { %s3288_s4 = scalar_lea.vmem %s3628_s16, %s2767_s10  ;;  %s979_s7 = scalar_lea.vmem %s3590_s18, %s3228_s0 }
  0x28   : > { %s982_s14 = scalar_lea.vmem %s3629_s20, %s3228_s0  ;;  %p2706_p5 = scmp.ne.s32.totalorder %s3630_s26, 0 }
  0x29   : > { %s3631_s28 = sld [smem:[#allocation11_spill]] (!%p2706_p5)  ;;  %vm1004_vm0 = vcmask (!%p2706_p5), 261120   ;;  %s3633_s20 = sld [smem:[#allocation12_spill]] (!%p2706_p5)  ;;  %v3083_v34 = vmov (!%p2706_p5), 1983009808   ;;  %v1094_v36 = vlaneseq (!%p2706_p5)  ;;  %vm1099_vm1 = vcmask (!%p2706_p5), 60416  }
  0x2a   : > { %993 = sbr.rel (%p2706_p5) target bundleno = 372 (0x174), region = 108  ;;  %v1092_v35 = vunpack.c.l.s4 (!%p2706_p5), %v3083_v34  ;;  %s3634_s23 = sld [smem:[#allocation13_spill]] (!%p2706_p5) }
  0x2b   : > { %v1095_v40 = vshrl.u32 (!%p2706_p5), %v1094_v36, 7  ;;  %s3635_s2 = sld [smem:[#allocation14_spill]] (!%p2706_p5) }
  0x2c   : > { %v1093_v39 = vunpack.c.0.s8 (!%p2706_p5), %v1092_v35 }
  0x2e   : > { %v1096_v42 = vsub.s32 (!%p2706_p5), %v1093_v39, %v1095_v40 }
  0x2f   : > { %s3632_s30 = smov (!%p2706_p5), %s3631_s28  ;;  %v2769_v0 = vld [vmem:[%s3631_s28] sm:$0xff] (!%p2706_p5)  }
  0x30   : > { %v2776_v1 = vld [vmem:[%s3632_s30 + $0x8] sm:$0xff] (!%p2706_p5)   ;;  %v2770_v2 = vunpack.c.l.bf16 (!%p2706_p5), %v2769_v0  ;;  %v2771_v4 = vunpack.c.h.bf16 (!%p2706_p5), %v2769_v0  ;;  %v1082_v30 = vld [vmem:[%s3633_s20] sm:$0x3] (!%p2706_p5)  ;;  %v1083_v31 = vld [vmem:[%s3633_s20 + $0x2] sm:$0x3] (!%p2706_p5) }
  0x31   : > { %v2774_v3 = vunpack.c.l.bf16 %v2776_v1  ;;  %v2775_v5 = vunpack.c.h.bf16 %v2776_v1  ;;  %v1084_v32 = vsub.f32 1.0, %v1082_v30  ;;  %v1085_v33 = vsub.f32 1.0, %v1083_v31  ;;  %v2707_v57 = vld [vmem:[%s3634_s23] ss:$0 sm:$0xff] }
  0x32   : > { %v1005_v6 = vsel %vm1004_vm0, %v2770_v2, 0.0  ;;  %v1008_v8 = vsel %vm1004_vm0, %v2771_v4, 0.0  ;;  %v2708_v59 = vld [vmem:[%s3635_s2] ss:$0 sm:$0xff] }
  0x33   : > { %v1011_v7 = vsel %vm1004_vm0, %v2774_v3, 0.0  ;;  %1006 = vadd.xlane.f32.xlu0 %v1005_v6  ;;  %v1014_v9 = vsel %vm1004_vm0, %v2775_v5, 0.0  ;;  %v1086_v37 = vmul.f32 -1e+09, %v1084_v32  ;;  %v1087_v38 = vmul.f32 -1e+09, %v1085_v33 }
  0x34   : > { %1012 = vadd.xlane.f32.xlu1 %v1011_v7 }
  0x35   : > { %v1090_v41 = vcombine.low %v1086_v37, %v1087_v38 }
  0x37   : > { %1009 = vadd.xlane.f32.xlu0 %v1008_v8  ;;  %v1097_v43 = vrot.slane %v1090_v41, %v1096_v42 }
  0x38   : > { %1015 = vadd.xlane.f32.xlu1 %v1014_v9 }
  0x39   : > { %1100 = vst.msk [vmem:[#allocation3] sm:$0xf] %vm1099_vm1, %v1097_v43 }
  0xc0   : > { %v1007_v10 = vpop.xlane.xlu0 %1006 }
  0xc1   : > { %v1013_v11 = vpop.xlane.xlu1 %1012  ;;  %v1018_v12 = vmul.f32 0.03125, %v1007_v10 }
  0xc2   : > { %v1020_v13 = vmul.f32 0.03125, %v1013_v11 }
  0xc3   : > { %v1022_v14 = vsub.f32 %v2770_v2, %v1018_v12 }
  0xc4   : > { %v1024_v15 = vsub.f32 %v2774_v3, %v1020_v13  ;;  %v1010_v16 = vpop.xlane.xlu0 %1009 }
  0xc5   : > { %v1016_v17 = vpop.xlane.xlu1 %1015  ;;  %v1019_v18 = vmul.f32 0.03125, %v1010_v16  ;;  %v1026_v20 = vmul.f32 %v1022_v14, %v1022_v14 }
  0xc6   : > { %v1021_v19 = vmul.f32 0.03125, %v1016_v17  ;;  %v1028_v21 = vmul.f32 %v1024_v15, %v1024_v15 }
  0xc7   : > { %v1023_v22 = vsub.f32 %v2771_v4, %v1019_v18  ;;  %v1030_v24 = vsel %vm1004_vm0, %v1026_v20, 0.0 }
  0xc8   : > { %v1025_v23 = vsub.f32 %v2775_v5, %v1021_v19  ;;  %1031 = vadd.xlane.f32.xlu0 %v1030_v24  ;;  %v1036_v25 = vsel %vm1004_vm0, %v1028_v21, 0.0 }
  0xc9   : > { %v1027_v26 = vmul.f32 %v1023_v22, %v1023_v22 }
  0xca   : > { %v1029_v27 = vmul.f32 %v1025_v23, %v1025_v23 }
  0xcb   : > { %v1033_v28 = vsel %vm1004_vm0, %v1027_v26, 0.0 }
  0xcc   : > { %1037 = vadd.xlane.f32.xlu0 %v1036_v25  ;;  %1034 = vadd.xlane.f32.xlu1 %v1033_v28  ;;  %v1039_v29 = vsel %vm1004_vm0, %v1029_v27, 0.0 }
  0xd0   : > { %1040 = vadd.xlane.f32.xlu1 %v1039_v29 }
 0x155   : > { %v1032_v44 = vpop.xlane.xlu0 %1031 }
 0x156   : > { %v1042_v45 = vmul.f32 0.03125, %v1032_v44 }
 0x158   : > { %v1046_v46 = vadd.f32 1e-12, %v1042_v45 }
 0x159   : > { %v1035_v47 = vpop.xlane.xlu1 %1034  ;;  %v1038_v48 = vpop.xlane.xlu0 %1037 }
 0x15a   : > { %2963 = vrsqrt.f32 %v1046_v46  ;;  %v1043_v49 = vmul.f32 0.03125, %v1035_v47  ;;  %v1044_v50 = vmul.f32 0.03125, %v1038_v48 }
 0x15c   : > { %v1047_v51 = vadd.f32 1e-12, %v1043_v49  ;;  %v1048_v52 = vadd.f32 1e-12, %v1044_v50 }
 0x15d   : > { %v1041_v53 = vpop.xlane.xlu1 %1040 }
 0x15e   : > { %2965 = vrsqrt.f32 %v1047_v51  ;;  %v1045_v54 = vmul.f32 0.03125, %v1041_v53 }
 0x15f   : > { %2967 = vrsqrt.f32 %v1048_v52 }
 0x160   : > { %v1049_v55 = vadd.f32 1e-12, %v1045_v54 }
 0x162   : > { %2969 = vrsqrt.f32 %v1049_v55 }
 0x164   : > { %v2964_v56 = vpop.eup %2963 }
 0x165   : > { %v1054_v58 = vmul.f32 %v2964_v56, %v1022_v14 }
 0x167   : > { %v1064_v60 = vmul.f32 %v2707_v57, %v1054_v58 }
 0x168   : > { %v2966_v61 = vpop.eup %2965 }
 0x169   : > { %v2968_v62 = vpop.eup %2967  ;;  %v1074_v63 = vadd.f32 %v2708_v59, %v1064_v60  ;;  %v1055_v0 = vmul.f32 %v2966_v61, %v1023_v22 }
 0x16a   : > { %v1056_v1 = vmul.f32 %v2968_v62, %v1024_v15 }
 0x16b   : > { %1078 = vst.msk [vmem:[#allocation2] sm:$0xff] %vm1004_vm0, %v1074_v63  ;;  %v1065_v2 = vmul.f32 %v2707_v57, %v1055_v0 }
 0x16c   : > { %v2970_v3 = vpop.eup %2969  ;;  %v1066_v4 = vmul.f32 %v2707_v57, %v1056_v1 }
 0x16d   : > { %v1075_v5 = vadd.f32 %v2708_v59, %v1065_v2  ;;  %v1057_v6 = vmul.f32 %v2970_v3, %v1025_v23 }
 0x16e   : > { %v1076_v7 = vadd.f32 %v2708_v59, %v1066_v4 }
 0x16f   : > { %1079 = vst.msk [vmem:[#allocation2 + $0x8] sm:$0xff] %vm1004_vm0, %v1075_v5  ;;  %v1067_v8 = vmul.f32 %v2707_v57, %v1057_v6 }
 0x170   : > { %1080 = vst.msk [vmem:[#allocation2 + $0x10] sm:$0xff] %vm1004_vm0, %v1076_v7 }
 0x171   : > { %v1077_v9 = vadd.f32 %v2708_v59, %v1067_v8 }
 0x173   : > { %1081 = vst.msk [vmem:[#allocation2 + $0x18] sm:$0xff] %vm1004_vm0, %v1077_v9 }
 0x174 PF: > { %v2971_v10 = vld [vmem:[%s3243_s21] sm:$0xff]   ;;  %v2972_v11 = vld [vmem:[%s3243_s21 + $0x8] sm:$0xff]   ;;  %vm1156_vm2 = vcmask 261120   ;;  %v3084_v22 = vmov 0.0   ;;  %vm3085_vm3 = vmmov 0   ;;  %s3638_s16 = sld [smem:[#allocation16_spill]]  ;;  %s3640_s3 = scalar_lea.vmem %s3581_s9, %s3228_s0  ;;  %v1118_v8 = vlaneseq }
 0x175   : > { %2829 = vmatprep.subr.bf16.mxu1 %v2971_v10  ;;  %v2973_v12 = vld [vmem:[%s3238_s27] sm:$0xff]   ;;  %v2974_v18 = vld [vmem:[%s3238_s27 + $0x8] sm:$0xff]   ;;  %vm1632_vm4 = vcmask 1043456   ;;  %v3086_v6 = vmov 1966171168   ;;  %vm1576_vm5 = vcmask 64512   ;;  %s3641_s5 = scalar_lea.vmem %s3583_s11, %s3228_s0  ;;  %s3642_s2 = scalar_lea.vmem %s3584_s12, %s3228_s0 }
 0x176   : > { %2830 = vmatpush3.bf16.msra.mxu1 %v2971_v10  ;;  %v3336_v13 = vld [vmem:[#allocation2] sm:$0xff]  ;;  %v3338_v14 = vld [vmem:[#allocation2 + $0x8] sm:$0xff]  ;;  %2821 = vmatprep.subr.bf16.mxu0 %v2973_v12  ;;  %v1116_v7 = vunpack.c.l.s4 %v3086_v6  ;;  %v3409_v10 = vshrl.u32 %v1118_v8, 7  ;;  %s3644_s8 = scalar_lea.vmem %s3587_s15, %s3228_s0  ;;  %vm2130_vm6 = vcmask 523264  }
 0x177   : > { %v3340_v15 = vld [vmem:[#allocation2 + $0x10] sm:$0xff]  ;;  %2831 = vmatprep.subr.bf16.mxu1 %v2972_v11  ;;  %v1136_v16 = vpack.c.bf16 %v3338_v14, %v3336_v13  ;;  %2822 = vmatpush3.bf16.msra.mxu0 %v2973_v12  ;;  %v2975_v20 = vld [vmem:[%s3252_s1] sm:$0xff]   ;;  %v2976_v21 = vld [vmem:[%s3252_s1 + $0x8] sm:$0xff]   ;;  %s3636_s1 = sld [smem:[#allocation18_spill]] }
 0x178   : > { %2823 = vmatprep.subr.bf16.mxu0 %v2974_v18  ;;  %v2720_v42 = vld [vmem:[%s3640_s3] ss:$0 sm:$0xff]  ;;  %v1117_v9 = vunpack.c.0.s8 %v1116_v7 }
 0x179   : > { %2833 = vmatprep.mubr.msk.bf16.mxu1 %vm1156_vm2, %v1136_v16  ;;  %2825 = vmatprep.mubr.msk.bf16.mxu0 %vm1156_vm2, %v1136_v16 }
 0x17a   : > { %v3344_v17 = vld [vmem:[#allocation2 + $0x18] sm:$0xff]  ;;  %2832 = vmatpush3.bf16.msra.mxu1 %v2972_v11  ;;  %s3639_s25 = scalar_lea.vmem %s3638_s16, %s3228_s0  ;;  %v2709_v11 = vld.sshfl [vmem:[#allocation3] sm:$0x33 pattern:$0x75316420]  ;;  %v1120_v12 = vsub.s32 %v1117_v9, %v3409_v10 }
 0x17b   : > { %v1137_v19 = vpack.c.bf16 %v3344_v17, %v3340_v15  ;;  %2824 = vmatpush3.bf16.msra.mxu0 %v2974_v18  ;;  %2845 = vmatprep.subr.bf16.mxu1 %v3084_v22  ;;  %v2710_v30 = vld [vmem:[%s3639_s25] ss:$0 sm:$0xff] }
 0x17c   : > { %2837 = vmatprep.subr.bf16.mxu0 %v2975_v20  ;;  %v1121_v18 = vrot.slane %v2709_v11, %v1120_v12 }
 0x17d   : > { %2834 = vmatmul.mubr.msk.bf16.vlgmr.msra.gmra.mrb[0].mxu1 %vm1156_vm2, %v1137_v19  ;;  %s3637_s28 = scalar_lea.vmem %s3636_s1, %s3228_s0  ;;  %s3643_s1 = scalar_lea.vmem %s3585_s13, %s3228_s0 }
 0x17e   : > { %2826 = vmatmul.mubr.msk.bf16.vlgmr.msra.gmra.mrb[0].mxu0 %vm1156_vm2, %v1137_v19  ;;  %2847 = vmatprep.mubr.msk.bf16.mxu1 %vm3085_vm3, %v3084_v22  ;;  %v2715_v23 = vld [vmem:[%s3637_s28] ss:$0 sm:$0xff] }
 0x17f   : > { %2838 = vmatpush3.bf16.msra.mxu0 %v2975_v20  ;;  %2841 = vmatprep.mubr.msk.bf16.mxu0 %vm1156_vm2, %v1136_v16  ;;  %v1114_v16 = vcombine.high %v2709_v11, %v2709_v11 }
 0x180   : > { %2839 = vmatprep.subr.bf16.mxu0 %v2976_v21 }
 0x181   : > { %v1128_v20 = vrot.slane %v1114_v16, %v1120_v12 }
 0x183   : > { %2840 = vmatpush3.bf16.msra.mxu0 %v2976_v21 }
 0x184   : > { %2851 = vmatprep.subr.bf16.mxu0 %v3084_v22 }
 0x186   : > { %2842 = vmatmul.mubr.msk.bf16.vlgmr.msra.gmra.mrb[4].mxu0 %vm1156_vm2, %v1137_v19  ;;  %v1554_v19 = vsub.s32 0, %v3409_v10 }
 0x187   : > { %2853 = vmatprep.mubr.msk.bf16.mxu0 %vm3085_vm3, %v3084_v22 }
 0x188   : > { %v1555_v21 = vrot.slane %v1121_v18, %v1554_v19 }
 0x250   : > { %v2835_v24 = vpop.f32.mrb[0].mxu1 }
 0x251   : > { %v1269_v25 = vpop.f32.mrb[1].mxu1  ;;  %v2827_v28 = vpop.f32.mrb[0].mxu0  ;;  %v1278_v36 = vadd.f32 %v2835_v24, %v2715_v23 }
 0x252   : > { %v1270_v26 = vadd.f32 %v2715_v23, %v1269_v25  ;;  %v2836_v27 = vpop.f32.mrb[2].mxu1  ;;  %v1197_v31 = vpop.f32.mrb[1].mxu0  ;;  %v1206_v61 = vadd.f32 %v2827_v28, %v2710_v30 }
 0x253   : > { %v1272_v29 = vpop.f32.mrb[3].mxu1  ;;  %v2828_v34 = vpop.f32.mrb[2].mxu0  ;;  %v1198_v39 = vadd.f32 %v2710_v30, %v1197_v31  ;;  %v1281_v40 = vadd.f32 %v2836_v27, %v2715_v23  ;;  %v1362_v43 = vpack.c.bf16 %v1278_v36, %v1278_v36 }
 0x254   : > { %v1360_v32 = vpack.c.bf16 %v1270_v26, %v1270_v26  ;;  %v1273_v33 = vadd.f32 %v2715_v23, %v1272_v29  ;;  %v1200_v35 = vpop.f32.mrb[3].mxu0  ;;  %v1209_v0 = vadd.f32 %v2828_v34, %v2710_v30  ;;  %v1358_v2 = vpack.c.bf16 %v1206_v61, %v1206_v61 }
 0x255   : > { %v1356_v44 = vpack.c.bf16 %v1198_v39, %v1198_v39  ;;  %v1201_v45 = vadd.f32 %v2710_v30, %v1200_v35  ;;  %v1363_v49 = vpack.c.bf16 %v1281_v40, %v1281_v40  ;;  %v1460_v55 = vsel %vm1156_vm2, %v1362_v43, 0 }
 0x256   : > { %v1368_v37 = vsel %vm1156_vm2, %v1360_v32, 0  ;;  %v1361_v38 = vpack.c.bf16 %v1273_v33, %v1273_v33  ;;  %v1359_v4 = vpack.c.bf16 %v1209_v0, %v1209_v0  ;;  %v1559_v26 = vrot.slane %v1128_v20, %v1554_v19 }
 0x257   : > { %2846 = vmatpush3.bf16.xpose.msra.mxu1 %v1368_v37  ;;  %v1357_v56 = vpack.c.bf16 %v1201_v45, %v1201_v45  ;;  %v1506_v60 = vsel %vm1156_vm2, %v1363_v49, 0  ;;  %v1129_v33 = vcombine.high %v1121_v18, %v1121_v18 }
 0x258   : > { %v1414_v41 = vsel %vm1156_vm2, %v1361_v38, 0  ;;  %2857 = vmatprep.subr.bf16.mxu1 %v3084_v22  ;;  %v1130_v38 = vcombine.high %v1128_v20, %v1128_v20 }
 0x259   : > { %2852 = vmatpush3.bf16.xpose.msra.mxu0 %v1414_v41  ;;  %v2843_v46 = vpop.f32.mrb[4].mxu0  ;;  %v1563_v39 = vrot.slane %v1129_v33, %v1554_v19 }
 0x25a   : > { %2863 = vmatprep.subr.bf16.mxu0 %v3084_v22  ;;  %v1350_v47 = vadd.f32 %v2843_v46, %v2720_v42  ;;  %v1341_v48 = vpop.f32.mrb[5].mxu0 }
 0x25b   : > { %v1342_v50 = vadd.f32 %v2720_v42, %v1341_v48  ;;  %v2844_v51 = vpop.f32.mrb[6].mxu0 }
 0x25c   : > { %v1627_v52 = vpack.c.bf16 %v1350_v47, %v1350_v47  ;;  %v1353_v53 = vadd.f32 %v2844_v51, %v2720_v42  ;;  %v1344_v54 = vpop.f32.mrb[7].mxu0 }
 0x25d   : > { %v1345_v57 = vadd.f32 %v2720_v42, %v1344_v54  ;;  %v1625_v62 = vpack.c.bf16 %v1342_v50, %v1342_v50 }
 0x25e   : > { %2848 = vmatmul.mubr.msk.bf16.vlgmr.msra.gmra.mrb[4].mxu1 %vm1156_vm2, %v1356_v44  ;;  %v3387_v58 = vsel %vm1632_vm4, %v1627_v52, 0  ;;  %v1628_v59 = vpack.c.bf16 %v1353_v53, %v1353_v53  ;;  %v1567_v44 = vrot.slane %v1130_v38, %v1554_v19 }
 0x25f   : > { %2858 = vmatpush3.bf16.xpose.msra.mxu1 %v1460_v55  ;;  %2859 = vmatprep.mubr.msk.bf16.mxu1 %vm3085_vm3, %v3084_v22  ;;  %v1626_v1 = vpack.c.bf16 %v1345_v57, %v1345_v57  ;;  %v1634_v3 = vsel %vm1632_vm4, %v1625_v62, 0 }
 0x260   : > { %2854 = vmatmul.mubr.msk.bf16.vlgmr.msra.gmra.mrb[8].mxu0 %vm1156_vm2, %v1357_v56  ;;  %2869 = vmatprep.subr.bf16.mxu1 %v3084_v22  ;;  %v3395_v63 = vsel %vm1632_vm4, %v1628_v59, 0 }
 0x261   : > { %2864 = vmatpush3.bf16.xpose.msra.mxu0 %v1506_v60  ;;  %2865 = vmatprep.mubr.msk.bf16.mxu0 %vm3085_vm3, %v3084_v22  ;;  %v1680_v5 = vsel %vm1632_vm4, %v1626_v1, 0 }
 0x262   : > { %2875 = vmatprep.subr.bf16.mxu0 %v3084_v22 }
 0x266   : > { %2860 = vmatmul.mubr.msk.bf16.vlgmr.msra.gmra.mrb[8].mxu1 %vm1156_vm2, %v1358_v2 }
 0x267   : > { %2870 = vmatpush3.bf16.msra.mxu1 %v1634_v3  ;;  %2871 = vmatprep.mubr.msk.bf16.mxu1 %vm3085_vm3, %v3084_v22 }
 0x268   : > { %2866 = vmatmul.mubr.msk.bf16.vlgmr.msra.gmra.mrb[12].mxu0 %vm1156_vm2, %v1359_v4  ;;  %2881 = vmatprep.subr.bf16.mxu1 %v3084_v22 }
 0x269   : > { %2876 = vmatpush3.bf16.msra.mxu0 %v1680_v5  ;;  %2877 = vmatprep.mubr.msk.bf16.mxu0 %vm3085_vm3, %v3084_v22 }
 0x26a   : > { %2887 = vmatprep.subr.bf16.mxu0 %v3084_v22 }
 0x331   : > { %v1404_v23 = vpop.f32.mrb[4].mxu1 }
 0x332   : > { %v1548_v24 = vmul.f32 0.17677669, %v1404_v23  ;;  %v2849_v25 = vpop.f32.mrb[5].mxu1 }
 0x333   : > { %v1407_v27 = vpop.f32.mrb[6].mxu1  ;;  %v1450_v28 = vpop.f32.mrb[8].mxu0 }
 0x334   : > { %v1549_v29 = vmul.f32 0.17677669, %v1450_v28  ;;  %v2850_v30 = vpop.f32.mrb[7].mxu1  ;;  %v2855_v31 = vpop.f32.mrb[9].mxu0  ;;  %v1572_v32 = vadd.f32 %v1555_v21, %v1548_v24 }
 0x335   : > { %v1453_v34 = vpop.f32.mrb[10].mxu0 }
 0x336   : > { %v2856_v35 = vpop.f32.mrb[11].mxu0  ;;  %v1577_v36 = vsel %vm1576_vm5, %v1572_v32, -inf  ;;  %v1573_v37 = vadd.f32 %v1559_v26, %v1549_v29 }
 0x337   : > { %1578 = vmax.xlane.f32.xlu0 %v1577_v36  ;;  %v2977_v36 = vld [vmem:[%s3261_s6] sm:$0xff]  }
 0x338   : > { %v1580_v43 = vsel %vm1576_vm5, %v1573_v37, -inf }
 0x339   : > { %v1496_v40 = vpop.f32.mrb[8].mxu1 }
 0x33a   : > { %v1550_v41 = vmul.f32 0.17677669, %v1496_v40  ;;  %v2861_v42 = vpop.f32.mrb[9].mxu1 }
 0x33b   : > { %v1542_v45 = vpop.f32.mrb[12].mxu0  ;;  %1581 = vmax.xlane.f32.xlu0 %v1580_v43  ;;  %v1499_v46 = vpop.f32.mrb[10].mxu1 }
 0x33c   : > { %v1551_v47 = vmul.f32 0.17677669, %v1542_v45  ;;  %v2862_v48 = vpop.f32.mrb[11].mxu1  ;;  %v2867_v49 = vpop.f32.mrb[13].mxu0  ;;  %v1574_v50 = vadd.f32 %v1563_v39, %v1550_v41 }
 0x33d   : > { %v1545_v51 = vpop.f32.mrb[14].mxu0 }
 0x33e   : > { %v2868_v52 = vpop.f32.mrb[15].mxu0  ;;  %v1583_v53 = vsel %vm1576_vm5, %v1574_v50, -inf  ;;  %v1575_v54 = vadd.f32 %v1567_v44, %v1551_v47 }
 0x33f   : > { %1584 = vmax.xlane.f32.xlu1 %v1583_v53 }
 0x340   : > { %v1586_v55 = vsel %vm1576_vm5, %v1575_v54, -inf }
 0x343   : > { %1587 = vmax.xlane.f32.xlu1 %v1586_v55 }
 0x3c4   : > { %v1579_v56 = vpop.xlane.xlu0 %1578 }
 0x3c5   : > { %v1589_v57 = vsub.f32 %v1572_v32, %v1579_v56 }
 0x3c7   : > { %v1593_v59 = vmul.f32 1.442695, %v1589_v57 }
 0x3c8   : > { %v1582_v60 = vpop.xlane.xlu0 %1581 }
 0x3c9   : > { %2985 = vpow2.f32 %v1593_v59  ;;  %v1590_v61 = vsub.f32 %v1573_v37, %v1582_v60  ;;  %v2978_v37 = vld [vmem:[%s3261_s6 + $0x8] sm:$0xff]  }
 0x3cb   : > { %v1595_v62 = vmul.f32 1.442695, %v1590_v61 }
 0x3cc   : > { %v1585_v0 = vpop.xlane.xlu1 %1584 }
 0x3cd   : > { %2987 = vpow2.f32 %v1595_v62  ;;  %v1591_v1 = vsub.f32 %v1574_v50, %v1585_v0 }
 0x3cf   : > { %v1597_v2 = vmul.f32 1.442695, %v1591_v1 }
 0x3d0   : > { %v1588_v3 = vpop.xlane.xlu1 %1587 }
 0x3d1   : > { %2989 = vpow2.f32 %v1597_v2  ;;  %v1592_v4 = vsub.f32 %v1575_v54, %v1588_v3  ;;  %v2733_v54 = vld [vmem:[%s3641_s5] ss:$0 sm:$0xff] }
 0x3d3   : > { %v2986_v5 = vpop.eup %2985  ;;  %v1599_v6 = vmul.f32 1.442695, %v1592_v4 }
 0x3d4   : > { %v1601_v7 = vsel %vm1576_vm5, %v2986_v5, 0.0 }
 0x3d5   : > { %2991 = vpow2.f32 %v1599_v6  ;;  %1602 = vadd.xlane.f32.xlu0 %v1601_v7 }
 0x3d7   : > { %v2988_v9 = vpop.eup %2987 }
 0x3d8   : > { %v1604_v11 = vsel %vm1576_vm5, %v2988_v9, 0.0 }
 0x3d9   : > { %1605 = vadd.xlane.f32.xlu1 %v1604_v11 }
 0x3db   : > { %v2990_v12 = vpop.eup %2989 }
 0x3dc   : > { %v1607_v16 = vsel %vm1576_vm5, %v2990_v12, 0.0 }
 0x3dd   : > { %1608 = vadd.xlane.f32.xlu0 %v1607_v16 }
 0x3df   : > { %v2992_v18 = vpop.eup %2991 }
 0x3e0   : > { %v1610_v19 = vsel %vm1576_vm5, %v2992_v18, 0.0 }
 0x3e1   : > { %1611 = vadd.xlane.f32.xlu1 %v1610_v19 }
 0x462   : > { %v1603_v20 = vpop.xlane.xlu0 %1602 }
 0x463   : > { %2993 = vrcp.f32 %v1603_v20 }
 0x466   : > { %v1606_v21 = vpop.xlane.xlu1 %1605 }
 0x467   : > { %2995 = vrcp.f32 %v1606_v21 }
 0x46a   : > { %v1609_v23 = vpop.xlane.xlu0 %1608 }
 0x46b   : > { %2997 = vrcp.f32 %v1609_v23 }
 0x46d   : > { %v2994_v24 = vpop.eup %2993 }
 0x46e   : > { %v1617_v25 = vmul.f32 %v2994_v24, %v2986_v5  ;;  %v1612_v26 = vpop.xlane.xlu1 %1611 }
 0x46f   : > { %2999 = vrcp.f32 %v1612_v26 }
 0x470   : > { %v1621_v27 = vpack.c.bf16 %v1617_v25, %v1617_v25 }
 0x471   : > { %v2996_v28 = vpop.eup %2995 }
 0x472   : > { %v1618_v29 = vmul.f32 %v2996_v28, %v2988_v9  ;;  %2872 = vmatmul.mubr.msk.bf16.vlgmr.msra.gmra.mrb[12].mxu1 %vm1576_vm5, %v1621_v27 }
 0x473   : > { %2882 = vmatpush3.bf16.msra.mxu1 %v3387_v58  ;;  %2883 = vmatprep.mubr.msk.bf16.mxu1 %vm3085_vm3, %v3084_v22 }
 0x474   : > { %v1622_v30 = vpack.c.bf16 %v1618_v29, %v1618_v29  ;;  %2893 = vmatprep.subr.bf16.mxu1 %v2977_v36 }
 0x475   : > { %v2998_v31 = vpop.eup %2997 }
 0x476   : > { %v1619_v32 = vmul.f32 %v2998_v31, %v2990_v12  ;;  %2878 = vmatmul.mubr.msk.bf16.vlgmr.msra.gmra.mrb[16].mxu0 %vm1576_vm5, %v1622_v30 }
 0x477   : > { %2888 = vmatpush3.bf16.msra.mxu0 %v3395_v63  ;;  %2889 = vmatprep.mubr.msk.bf16.mxu0 %vm3085_vm3, %v3084_v22 }
 0x478   : > { %v1623_v33 = vpack.c.bf16 %v1619_v32, %v1619_v32  ;;  %v2979_v32 = vld [vmem:[%s3278_s24] sm:$0xff]  }
 0x479   : > { %v3000_v34 = vpop.eup %2999  ;;  %2901 = vmatprep.subr.bf16.mxu0 %v2979_v32 }
 0x47a   : > { %v1620_v35 = vmul.f32 %v3000_v34, %v2992_v18  ;;  %2884 = vmatmul.mubr.msk.bf16.vlgmr.msra.gmra.mrb[16].mxu1 %vm1576_vm5, %v1623_v33  ;;  %v2980_v33 = vld [vmem:[%s3278_s24 + $0x8] sm:$0xff]  }
 0x47b   : > { %2894 = vmatpush3.bf16.msra.mxu1 %v2977_v36 }
 0x47c   : > { %v1624_v58 = vpack.c.bf16 %v1620_v35, %v1620_v35  ;;  %2895 = vmatprep.subr.bf16.mxu1 %v2978_v37 }
 0x47e   : > { %2890 = vmatmul.mubr.msk.bf16.vlgmr.msra.gmra.mrb[20].mxu0 %vm1576_vm5, %v1624_v58 }
 0x47f   : > { %2896 = vmatpush3.bf16.msra.mxu1 %v2978_v37  ;;  %2902 = vmatpush3.bf16.msra.mxu0 %v2979_v32 }
 0x480   : > { %2903 = vmatprep.subr.bf16.mxu0 %v2980_v33 }
 0x483   : > { %2904 = vmatpush3.bf16.msra.mxu0 %v2980_v33 }
 0x545   : > { %v1670_v38 = vpop.f32.mrb[12].mxu1 }
 0x546   : > { %v2873_v39 = vpop.f32.mrb[13].mxu1 }
 0x547   : > { %v1673_v63 = vpop.f32.mrb[14].mxu1 }
 0x548   : > { %v2874_v40 = vpop.f32.mrb[15].mxu1 }
 0x549   : > { %v1716_v41 = vpop.f32.mrb[16].mxu0 }
 0x54a   : > { %v1819_v22 = vpack.c.bf16 %v1716_v41, %v1670_v38  ;;  %v2879_v42 = vpop.f32.mrb[17].mxu0 }
 0x54b   : > { %v1719_v43 = vpop.f32.mrb[18].mxu0 }
 0x54c   : > { %v2880_v44 = vpop.f32.mrb[19].mxu0  ;;  %2897 = vmatprep.mubr.msk.bf16.mxu1 %vm1156_vm2, %v1819_v22 }
 0x54d   : > { %v1762_v45 = vpop.f32.mrb[16].mxu1  ;;  %v2738_v44 = vld [vmem:[%s3642_s2] ss:$0 sm:$0xff] }
 0x54e   : > { %v2885_v46 = vpop.f32.mrb[17].mxu1 }
 0x54f   : > { %v1765_v47 = vpop.f32.mrb[18].mxu1 }
 0x550   : > { %v2886_v48 = vpop.f32.mrb[19].mxu1 }
 0x551   : > { %v1808_v49 = vpop.f32.mrb[20].mxu0 }
 0x552   : > { %v1820_v50 = vpack.c.bf16 %v1808_v49, %v1762_v45  ;;  %v2891_v51 = vpop.f32.mrb[21].mxu0 }
 0x553   : > { %v1811_v52 = vpop.f32.mrb[22].mxu0 }
 0x554   : > { %v2892_v53 = vpop.f32.mrb[23].mxu0  ;;  %2898 = vmatmul.mubr.msk.bf16.vlgmr.msra.gmra.mrb[20].mxu1 %vm1156_vm2, %v1820_v50  ;;  %v2739_v50 = vld [vmem:[%s3643_s1] ss:$0 sm:$0xff] }
 0x627   : > { %v2899_v55 = vpop.f32.mrb[20].mxu1 }
 0x628   : > { %v1879_v56 = vpop.f32.mrb[21].mxu1  ;;  %v1888_v57 = vadd.f32 %v2899_v55, %v2733_v54 }
 0x629   : > { %v1880_v59 = vadd.f32 %v2733_v54, %v1879_v56  ;;  %v2900_v60 = vpop.f32.mrb[22].mxu1 }
 0x62a   : > { %v1882_v61 = vpop.f32.mrb[23].mxu1  ;;  %v1891_v62 = vadd.f32 %v2900_v60, %v2733_v54  ;;  %v1896_v4 = vadd.f32 %v1888_v57, %v3340_v15 }
 0x62b   : > { %v1883_v0 = vadd.f32 %v2733_v54, %v1882_v61  ;;  %v1894_v1 = vadd.f32 %v1880_v59, %v3336_v13 }
 0x62c   : > { %v1897_v6 = vadd.f32 %v1891_v62, %v3344_v17  ;;  %v1906_v7 = vsel %vm1156_vm2, %v1896_v4, 0.0 }
 0x62d   : > { %v1900_v2 = vsel %vm1156_vm2, %v1894_v1, 0.0  ;;  %v1895_v3 = vadd.f32 %v1883_v0, %v3338_v14 }
 0x62e   : > { %1901 = vadd.xlane.f32.xlu0 %v1900_v2  ;;  %v1909_v9 = vsel %vm1156_vm2, %v1897_v6, 0.0  ;;  %v2982_v2 = vld [vmem:[%s3288_s4 + $0x8] sm:$0xff]  }
 0x62f   : > { %v1903_v5 = vsel %vm1156_vm2, %v1895_v3, 0.0 }
 0x630   : > { %1904 = vadd.xlane.f32.xlu1 %v1903_v5  ;;  %v2740_v5 = vld [vmem:[%s3644_s8] ss:$0 sm:$0xff] }
 0x632   : > { %1907 = vadd.xlane.f32.xlu0 %v1906_v7 }
 0x634   : > { %1910 = vadd.xlane.f32.xlu1 %v1909_v9 }
 0x6bb   : > { %v1902_v11 = vpop.xlane.xlu0 %1901 }
 0x6bc   : > { %v1913_v13 = vmul.f32 0.03125, %v1902_v11 }
 0x6bd   : > { %v1905_v12 = vpop.xlane.xlu1 %1904 }
 0x6be   : > { %v1917_v16 = vsub.f32 %v1894_v1, %v1913_v13  ;;  %v1914_v18 = vmul.f32 0.03125, %v1905_v12  ;;  %v2981_v1 = vld [vmem:[%s3288_s4] sm:$0xff]  }
 0x6bf   : > { %v1908_v14 = vpop.xlane.xlu0 %1907  ;;  %2909 = vmatprep.subr.bf16.mxu1 %v2981_v1 }
 0x6c0   : > { %v1918_v19 = vsub.f32 %v1895_v3, %v1914_v18  ;;  %v1915_v15 = vmul.f32 0.03125, %v1908_v14  ;;  %v1921_v20 = vmul.f32 %v1917_v16, %v1917_v16  ;;  %2910 = vmatpush3.bf16.msra.mxu1 %v2981_v1  ;;  %v2983_v3 = vld [vmem:[%s3288_s4 + $0x10] sm:$0xff]  }
 0x6c1   : > { %v1911_v21 = vpop.xlane.xlu1 %1910  ;;  %2911 = vmatprep.subr.bf16.mxu1 %v2982_v2 }
 0x6c2   : > { %v1919_v23 = vsub.f32 %v1896_v4, %v1915_v15  ;;  %v1916_v17 = vmul.f32 0.03125, %v1911_v21  ;;  %v1925_v24 = vsel %vm1156_vm2, %v1921_v20, 0.0  ;;  %v1922_v25 = vmul.f32 %v1918_v19, %v1918_v19  ;;  %v2984_v4 = vld [vmem:[%s3288_s4 + $0x18] sm:$0xff]  }
 0x6c3   : > { %1926 = vadd.xlane.f32.xlu0 %v1925_v24 }
 0x6c4   : > { %v1920_v26 = vsub.f32 %v1897_v6, %v1916_v17  ;;  %v1928_v27 = vsel %vm1156_vm2, %v1922_v25, 0.0  ;;  %v1923_v28 = vmul.f32 %v1919_v23, %v1919_v23  ;;  %2912 = vmatpush3.bf16.msra.mxu1 %v2982_v2 }
 0x6c5   : > { %1929 = vadd.xlane.f32.xlu1 %v1928_v27  ;;  %2913 = vmatprep.subr.bf16.mxu1 %v2983_v3 }
 0x6c6   : > { %v1931_v29 = vsel %vm1156_vm2, %v1923_v28, 0.0  ;;  %v1924_v30 = vmul.f32 %v1920_v26, %v1920_v26 }
 0x6c7   : > { %1932 = vadd.xlane.f32.xlu0 %v1931_v29 }
 0x6c8   : > { %v1934_v31 = vsel %vm1156_vm2, %v1924_v30, 0.0  ;;  %2914 = vmatpush3.bf16.msra.mxu1 %v2983_v3 }
 0x6c9   : > { %1935 = vadd.xlane.f32.xlu1 %v1934_v31  ;;  %2915 = vmatprep.subr.bf16.mxu1 %v2984_v4 }
 0x6cc   : > { %2916 = vmatpush3.bf16.msra.mxu1 %v2984_v4 }
 0x750   : > { %v1927_v34 = vpop.xlane.xlu0 %1926 }
 0x751   : > { %v1937_v35 = vmul.f32 0.03125, %v1927_v34 }
 0x752   : > { %v1930_v58 = vpop.xlane.xlu1 %1929 }
 0x753   : > { %v1941_v36 = vadd.f32 1e-12, %v1937_v35  ;;  %v1938_v37 = vmul.f32 0.03125, %v1930_v58 }
 0x754   : > { %v1933_v38 = vpop.xlane.xlu0 %1932 }
 0x755   : > { %3001 = vrsqrt.f32 %v1941_v36  ;;  %v1942_v39 = vadd.f32 1e-12, %v1938_v37  ;;  %v1939_v63 = vmul.f32 0.03125, %v1933_v38 }
 0x756   : > { %v1936_v40 = vpop.xlane.xlu1 %1935 }
 0x757   : > { %3003 = vrsqrt.f32 %v1942_v39  ;;  %v1943_v41 = vadd.f32 1e-12, %v1939_v63  ;;  %v1940_v22 = vmul.f32 0.03125, %v1936_v40 }
 0x759   : > { %3005 = vrsqrt.f32 %v1943_v41  ;;  %v1944_v42 = vadd.f32 1e-12, %v1940_v22 }
 0x75b   : > { %3007 = vrsqrt.f32 %v1944_v42 }
 0x75f   : > { %v3002_v43 = vpop.eup %3001 }
 0x760   : > { %v1949_v45 = vmul.f32 %v3002_v43, %v1917_v16 }
 0x761   : > { %v3004_v46 = vpop.eup %3003 }
 0x762   : > { %v1950_v47 = vmul.f32 %v3004_v46, %v1918_v19  ;;  %v1959_v48 = vmul.f32 %v2738_v44, %v1949_v45 }
 0x763   : > { %v3006_v49 = vpop.eup %3005 }
 0x764   : > { %v1951_v51 = vmul.f32 %v3006_v49, %v1919_v23  ;;  %v1960_v52 = vmul.f32 %v2738_v44, %v1950_v47  ;;  %v3464_v56 = vadd.f32 %v2739_v50, %v1959_v48 }
 0x765   : > { %v3008_v53 = vpop.eup %3007 }
 0x766   : > { %v1961_v54 = vmul.f32 %v2738_v44, %v1951_v51  ;;  %v1952_v55 = vmul.f32 %v3008_v53, %v1920_v26  ;;  %v3466_v57 = vadd.f32 %v2739_v50, %v1960_v52  ;;  %v2745_v52 = vld [vmem:[%s976_s19] ss:$0 sm:$0xff] }
 0x768   : > { %v1962_v59 = vmul.f32 %v2738_v44, %v1952_v55  ;;  %v1978_v60 = vpack.c.bf16 %v3466_v57, %v3464_v56  ;;  %v3471_v61 = vadd.f32 %v2739_v50, %v1961_v54 }
 0x76a   : > { %2905 = vmatprep.mubr.msk.bf16.mxu0 %vm1156_vm2, %v1978_v60  ;;  %v3473_v62 = vadd.f32 %v2739_v50, %v1962_v59 }
 0x76c   : > { %v1979_v0 = vpack.c.bf16 %v3473_v62, %v3471_v61 }
 0x76e   : > { %2906 = vmatmul.mubr.msk.bf16.vlgmr.msra.gmra.mrb[24].mxu0 %vm1156_vm2, %v1979_v0 }
 0x841   : > { %v2907_v6 = vpop.f32.mrb[24].mxu0 }
 0x842   : > { %v2047_v7 = vadd.f32 %v2907_v6, %v2740_v5  ;;  %v2038_v9 = vpop.f32.mrb[25].mxu0 }
 0x843   : > { %v2039_v11 = vadd.f32 %v2740_v5, %v2038_v9  ;;  %v2908_v13 = vpop.f32.mrb[26].mxu0 }
 0x844   : > { %v2059_v12 = vmul.f32 0.044715, %v2047_v7  ;;  %v2050_v16 = vadd.f32 %v2908_v13, %v2740_v5  ;;  %v2041_v18 = vpop.f32.mrb[27].mxu0  ;;  %v2055_v41 = vmul.f32 0.5, %v2047_v7 }
 0x845   : > { %v2057_v14 = vmul.f32 0.044715, %v2039_v11  ;;  %v2042_v19 = vadd.f32 %v2740_v5, %v2041_v18  ;;  %v2053_v43 = vmul.f32 0.5, %v2039_v11 }
 0x846   : > { %v2063_v15 = vmul.f32 %v2059_v12, %v2047_v7  ;;  %v2060_v20 = vmul.f32 0.044715, %v2050_v16  ;;  %v2056_v22 = vmul.f32 0.5, %v2050_v16 }
 0x847   : > { %v2061_v21 = vmul.f32 %v2057_v14, %v2039_v11  ;;  %v2058_v23 = vmul.f32 0.044715, %v2042_v19  ;;  %v2054_v44 = vmul.f32 0.5, %v2042_v19 }
 0x848   : > { %v2067_v17 = vmul.f32 %v2063_v15, %v2047_v7  ;;  %v2064_v24 = vmul.f32 %v2060_v20, %v2050_v16 }
 0x849   : > { %v2065_v25 = vmul.f32 %v2061_v21, %v2039_v11  ;;  %v2062_v26 = vmul.f32 %v2058_v23, %v2042_v19 }
 0x84a   : > { %v2071_v27 = vadd.f32 %v2067_v17, %v2047_v7  ;;  %v2068_v28 = vmul.f32 %v2064_v24, %v2050_v16 }
 0x84b   : > { %v2069_v29 = vadd.f32 %v2065_v25, %v2039_v11  ;;  %v2066_v30 = vmul.f32 %v2062_v26, %v2042_v19 }
 0x84c   : > { %v2075_v31 = vmul.f32 0.7978846, %v2071_v27  ;;  %v2072_v32 = vadd.f32 %v2068_v28, %v2050_v16 }
 0x84d   : > { %v2073_v33 = vmul.f32 0.7978846, %v2069_v29  ;;  %v2070_v34 = vadd.f32 %v2066_v30, %v2042_v19 }
 0x84e   : > { %3009 = vtanh.f32 %v2075_v31  ;;  %v2076_v35 = vmul.f32 0.7978846, %v2072_v32 }
 0x84f   : > { %3011 = vtanh.f32 %v2073_v33  ;;  %v2074_v58 = vmul.f32 0.7978846, %v2070_v34 }
 0x850   : > { %3013 = vtanh.f32 %v2076_v35 }
 0x851   : > { %3015 = vtanh.f32 %v2074_v58 }
 0x858   : > { %v3010_v36 = vpop.eup %3009 }
 0x859   : > { %v3012_v37 = vpop.eup %3011  ;;  %v2083_v38 = vadd.f32 1.0, %v3010_v36 }
 0x85a   : > { %v3014_v39 = vpop.eup %3013  ;;  %v2081_v63 = vadd.f32 1.0, %v3012_v37 }
 0x85b   : > { %v3016_v40 = vpop.eup %3015  ;;  %v2084_v42 = vadd.f32 1.0, %v3014_v39  ;;  %v2087_v46 = vmul.f32 %v2083_v38, %v2055_v41  ;;  %v2752_v41 = vld [vmem:[%s979_s7] ss:$0 sm:$0xff] }
 0x85c   : > { %v2082_v45 = vadd.f32 1.0, %v3016_v40  ;;  %v2085_v48 = vmul.f32 %v2081_v63, %v2053_v43  ;;  %v2753_v43 = vld [vmem:[%s982_s14] ss:$0 sm:$0xff]  ;;  %s3646_s14 = sld [smem:[#allocation7_spill]] }
 0x85d   : > { %v2088_v47 = vmul.f32 %v2084_v42, %v2056_v22 }
 0x85e   : > { %v2086_v49 = vmul.f32 %v2082_v45, %v2054_v44 }
 0x85f   : > { %v2099_v50 = vpack.c.bf16 %v2088_v47, %v2087_v46 }
 0x860   : > { %v2098_v51 = vpack.c.bf16 %v2086_v49, %v2085_v48 }
 0x862   : > { %2917 = vmatprep.mubr.msk.bf16.mxu1 %vm2130_vm6, %v2098_v51  ;;  %p2754_p6 = scmp.ne.s32.totalorder %s3646_s14, 1 }
 0x863   : > { %2918 = vmatmul.mubr.msk.bf16.vlgmr.msra.gmra.mrb[24].mxu1 %vm2130_vm6, %v2099_v50  ;;  %vm3088_vm7 = vmmov (!%p2754_p6), 0   ;;  %vm2306_vm8 = vcmask (!%p2754_p6), 1041409   ;;  %vm2391_vm10 = vcmask (!%p2754_p6), 9216   ;;  %vm2399_vm11 = vcmask (!%p2754_p6), 8192   ;;  %s3647_s6 = sld [smem:[#allocation24_spill]] (!%p2754_p6)  ;;  %s3648_s24 = sld [smem:[#allocation26_spill]] (!%p2754_p6) }
 0x936   : > { %v2919_v53 = vpop.f32.mrb[24].mxu1 }
 0x937   : > { %v2171_v54 = vpop.f32.mrb[25].mxu1  ;;  %v2180_v55 = vadd.f32 %v2919_v53, %v2745_v52 }
 0x938   : > { %v2172_v59 = vadd.f32 %v2745_v52, %v2171_v54  ;;  %v2920_v60 = vpop.f32.mrb[26].mxu1 }
 0x939   : > { %v2174_v0 = vpop.f32.mrb[27].mxu1  ;;  %v2183_v1 = vadd.f32 %v2920_v60, %v2745_v52  ;;  %v2188_v6 = vadd.f32 %v2180_v55, %v3471_v61 }
 0x93a   : > { %v2175_v2 = vadd.f32 %v2745_v52, %v2174_v0  ;;  %v2186_v3 = vadd.f32 %v2172_v59, %v3464_v56 }
 0x93b   : > { %v2189_v9 = vadd.f32 %v2183_v1, %v3473_v62  ;;  %v2198_v11 = vsel %vm1156_vm2, %v2188_v6, 0.0  ;;  %v3087_v1 = vmov (!%p2754_p6), 0.0  }
 0x93c   : > { %v2192_v4 = vsel %vm1156_vm2, %v2186_v3, 0.0  ;;  %v2187_v5 = vadd.f32 %v2175_v2, %v3466_v57  ;;  %2921 = vmatprep.subr.mxu0 (!%p2754_p6), %v3087_v1  ;;  %2923 = vmatprep.mubr.msk.f32.mxu0 (!%p2754_p6), %vm3088_vm7, %v3087_v1 }
 0x93d   : > { %2193 = vadd.xlane.f32.xlu0 %v2192_v4  ;;  %v2201_v13 = vsel %vm1156_vm2, %v2189_v9, 0.0 }
 0x93e   : > { %v2195_v7 = vsel %vm1156_vm2, %v2187_v5, 0.0 }
 0x93f   : > { %2196 = vadd.xlane.f32.xlu1 %v2195_v7 }
 0x941   : > { %2199 = vadd.xlane.f32.xlu0 %v2198_v11 }
 0x943   : > { %2202 = vadd.xlane.f32.xlu1 %v2201_v13 }
 0x9ca   : > { %v2194_v12 = vpop.xlane.xlu0 %2193 }
 0x9cb   : > { %v2204_v56 = vmul.f32 0.03125, %v2194_v12 }
 0x9cc   : > { %v2197_v16 = vpop.xlane.xlu1 %2196 }
 0x9cd   : > { %v2208_v18 = vsub.f32 %v2186_v3, %v2204_v56  ;;  %v2205_v14 = vmul.f32 0.03125, %v2197_v16 }
 0x9ce   : > { %v2200_v57 = vpop.xlane.xlu0 %2199 }
 0x9cf   : > { %v2209_v19 = vsub.f32 %v2187_v5, %v2205_v14  ;;  %v2206_v61 = vmul.f32 0.03125, %v2200_v57  ;;  %v2212_v15 = vmul.f32 %v2208_v18, %v2208_v18 }
 0x9d0   : > { %v2203_v20 = vpop.xlane.xlu1 %2202 }
 0x9d1   : > { %v2210_v21 = vsub.f32 %v2188_v6, %v2206_v61  ;;  %v2207_v23 = vmul.f32 0.03125, %v2203_v20  ;;  %v2216_v62 = vsel %vm1156_vm2, %v2212_v15, 0.0  ;;  %v2213_v17 = vmul.f32 %v2209_v19, %v2209_v19 }
 0x9d2   : > { %2217 = vadd.xlane.f32.xlu0 %v2216_v62 }
 0x9d3   : > { %v2211_v24 = vsub.f32 %v2189_v9, %v2207_v23  ;;  %v2219_v25 = vsel %vm1156_vm2, %v2213_v17, 0.0  ;;  %v2214_v26 = vmul.f32 %v2210_v21, %v2210_v21 }
 0x9d4   : > { %2220 = vadd.xlane.f32.xlu1 %v2219_v25 }
 0x9d5   : > { %v2222_v27 = vsel %vm1156_vm2, %v2214_v26, 0.0  ;;  %v2215_v28 = vmul.f32 %v2211_v24, %v2211_v24 }
 0x9d6   : > { %2223 = vadd.xlane.f32.xlu0 %v2222_v27 }
 0x9d7   : > { %v2225_v29 = vsel %vm1156_vm2, %v2215_v28, 0.0 }
 0x9d8   : > { %2226 = vadd.xlane.f32.xlu1 %v2225_v29 }
 0xa5f   : > { %v2218_v30 = vpop.xlane.xlu0 %2217 }
 0xa60   : > { %v2228_v31 = vmul.f32 0.03125, %v2218_v30 }
 0xa61   : > { %v2221_v32 = vpop.xlane.xlu1 %2220 }
 0xa62   : > { %v2232_v33 = vadd.f32 1e-12, %v2228_v31  ;;  %v2229_v34 = vmul.f32 0.03125, %v2221_v32 }
 0xa63   : > { %v2224_v35 = vpop.xlane.xlu0 %2223 }
 0xa64   : > { %3017 = vrsqrt.f32 %v2232_v33  ;;  %v2233_v58 = vadd.f32 1e-12, %v2229_v34  ;;  %v2230_v36 = vmul.f32 0.03125, %v2224_v35  ;;  %v2388_v33 = vand.u32 (!%p2754_p6), 127, %v1118_v8 }
 0xa65   : > { %v2227_v37 = vpop.xlane.xlu1 %2226 }
 0xa66   : > { %3019 = vrsqrt.f32 %v2233_v58  ;;  %v2234_v38 = vadd.f32 1e-12, %v2230_v36  ;;  %v2231_v39 = vmul.f32 0.03125, %v2227_v37  ;;  %vm2389_vm9 = vcmp.eq.s32.totalorder (!%p2754_p6), %v3409_v10, %v2388_v33 }
 0xa68   : > { %3021 = vrsqrt.f32 %v2234_v38  ;;  %v2235_v63 = vadd.f32 1e-12, %v2231_v39 }
 0xa6a   : > { %3023 = vrsqrt.f32 %v2235_v63 }
 0xa6e   : > { %v3018_v40 = vpop.eup %3017 }
 0xa6f   : > { %v2240_v22 = vmul.f32 %v3018_v40, %v2208_v18 }
 0xa70   : > { %v3020_v42 = vpop.eup %3019 }
 0xa71   : > { %v2250_v44 = vmul.f32 %v2752_v41, %v2240_v22  ;;  %v2241_v45 = vmul.f32 %v3020_v42, %v2209_v19 }
 0xa72   : > { %v3022_v46 = vpop.eup %3021 }
 0xa73   : > { %v2260_v47 = vadd.f32 %v2753_v43, %v2250_v44  ;;  %v2251_v48 = vmul.f32 %v2752_v41, %v2241_v45  ;;  %v2242_v49 = vmul.f32 %v3022_v46, %v2210_v21  ;;  %v2401_v44 = vld [vmem:[%s3647_s6] sm:$0x1] (!%p2754_p6) }
 0xa74   : > { %v3024_v50 = vpop.eup %3023 }
 0xa75   : > { %2264 = vst.msk [vmem:[#allocation2] sm:$0xff] %vm1156_vm2, %v2260_v47  ;;  %v2261_v51 = vadd.f32 %v2753_v43, %v2251_v48  ;;  %v2252_v52 = vmul.f32 %v2752_v41, %v2242_v49  ;;  %v2243_v53 = vmul.f32 %v3024_v50, %v2211_v24  ;;  %2271 = sbr.rel (%p2754_p6) target bundleno = 2963 (0xb93), region = 112  ;;  %v2272_v4 = vsel (!%p2754_p6), %vm1156_vm2, %v2260_v47, 0.0 }
 0xa76   : > { %v2273_v5 = vrot.slane (!%p2754_p6), %v2272_v4, 4 }
 0xa77   : > { %2265 = vst.msk [vmem:[#allocation2 + $0x8] sm:$0xff] %vm1156_vm2, %v2261_v51  ;;  %v2262_v54 = vadd.f32 %v2753_v43, %v2252_v52  ;;  %v2253_v55 = vmul.f32 %v2752_v41, %v2243_v53  ;;  %v2279_v6 = vsel (!%p2754_p6), %vm1156_vm2, %v2261_v51, 0.0 }
 0xa78   : > { %v2280_v11 = vrot.slane (!%p2754_p6), %v2279_v6, 4  ;;  %v2274_v13 = vadd.f32 (!%p2754_p6), %v2273_v5, %v2272_v4 }
 0xa79   : > { %2266 = vst.msk [vmem:[#allocation2 + $0x10] sm:$0xff] %vm1156_vm2, %v2262_v54  ;;  %v2263_v59 = vadd.f32 %v2753_v43, %v2253_v55  ;;  %v2286_v60 = vsel (!%p2754_p6), %vm1156_vm2, %v2262_v54, 0.0 }
 0xa7a   : > { %v2287_v2 = vrot.slane (!%p2754_p6), %v2286_v60, 4  ;;  %v2281_v16 = vadd.f32 (!%p2754_p6), %v2280_v11, %v2279_v6  ;;  %v2275_v18 = vrot.slane (!%p2754_p6), %v2274_v13, 2 }
 0xa7b   : > { %2267 = vst.msk [vmem:[#allocation2 + $0x18] sm:$0xff] %vm1156_vm2, %v2263_v59  ;;  %v2293_v0 = vsel (!%p2754_p6), %vm1156_vm2, %v2263_v59, 0.0 }
 0xa7c   : > { %v2294_v3 = vrot.slane %v2293_v0, 4  ;;  %v2288_v7 = vadd.f32 %v2287_v2, %v2286_v60  ;;  %v2282_v19 = vrot.slane %v2281_v16, 2  ;;  %v2276_v61 = vadd.f32 %v2275_v18, %v2274_v13 }
 0xa7e   : > { %v2295_v9 = vadd.f32 %v2294_v3, %v2293_v0  ;;  %v2289_v12 = vrot.slane %v2288_v7, 2  ;;  %v2283_v21 = vadd.f32 %v2282_v19, %v2281_v16  ;;  %v2277_v23 = vrot.slane %v2276_v61, 1 }
 0xa80   : > { %v2296_v56 = vrot.slane %v2295_v9, 2  ;;  %v2290_v14 = vadd.f32 %v2289_v12, %v2288_v7  ;;  %v2284_v24 = vrot.slane %v2283_v21, 1  ;;  %v2278_v25 = vadd.f32 %v2277_v23, %v2276_v61 }
 0xa82   : > { %v2297_v57 = vadd.f32 %v2296_v56, %v2295_v9  ;;  %v2291_v15 = vrot.slane %v2290_v14, 1  ;;  %v2285_v28 = vadd.f32 %v2284_v24, %v2283_v21  ;;  %v2300_v29 = vmul.f32 0.125, %v2278_v25 }
 0xa84   : > { %v2298_v20 = vrot.slane %v2297_v57, 1  ;;  %v2292_v62 = vadd.f32 %v2291_v15, %v2290_v14  ;;  %v2301_v31 = vmul.f32 0.125, %v2285_v28 }
 0xa86   : > { %v2299_v17 = vadd.f32 %v2298_v20, %v2297_v57  ;;  %v2302_v26 = vmul.f32 0.125, %v2292_v62  ;;  %v2307_v32 = vsel %vm2306_vm8, %v2301_v31, %v2300_v29 }
 0xa88   : > { %v2303_v27 = vmul.f32 0.125, %v2299_v17 }
 0xa8a   : > { %v2310_v30 = vsel %vm2306_vm8, %v2303_v27, %v2302_v26 }
 0xa8b   : > { %2922 = vmatpush3.xpose.msk.msra.mxu0 %vm1156_vm2, %v2310_v30 }
 0xa8e   : > { %2924 = vmatmul.mubr.msk.f32.vlgmr.msra.gmra.mrb[0].mxu0 %vm1156_vm2, %v2307_v32 }
 0xb61   : > { %v2381_v34 = vpop.f32.mrb[0].mxu0 }
 0xb62   : > { %v2390_v35 = vsel %vm2389_vm9, %v2381_v34, 0.0  ;;  %v2925_v58 = vpop.f32.mrb[1].mxu0 }
 0xb63   : > { %v2392_v36 = vsel %vm2391_vm10, %v2390_v35, 0.0 }
 0xb64   : > { %v2393_v37 = vrot.slane %v2392_v36, 4 }
 0xb66   : > { %v2394_v38 = vadd.f32 %v2393_v37, %v2392_v36 }
 0xb68   : > { %v2395_v39 = vrot.slane %v2394_v38, 2 }
 0xb6a   : > { %v2396_v63 = vadd.f32 %v2395_v39, %v2394_v38 }
 0xb6c   : > { %v2397_v40 = vrot.slane %v2396_v63, 1 }
 0xb6e   : > { %v2398_v41 = vadd.f32 %v2397_v40, %v2396_v63 }
 0xb70   : > { %2400 = vst.msk [vmem:[#allocation4] sm:$0x1] %vm2399_vm11, %v2398_v41  ;;  %v2405_v22 = vand.u32 2147483647, %v2398_v41  ;;  %v2402_v45 = vmax.f32 %v2398_v41, 0.0  ;;  %v2403_v46 = vmul.f32 %v2401_v44, %v2398_v41 }
 0xb72   : > { %v2406_v42 = vsub.f32 0.0, %v2405_v22  ;;  %v2404_v48 = vsub.f32 %v2402_v45, %v2403_v46 }
 0xb74   : > { %v2407_v43 = vmul.f32 1.442695, %v2406_v42 }
 0xb76   : > { %3025 = vpow2.f32 %v2407_v43 }
 0xb80   : > { %v3026_v8 = vpop.eup %3025 }
 0xb81   : > { %v2409_v10 = vadd.f32 1.0, %v3026_v8 }
 0xb83   : > { %3027 = vlog2.f32 %v2409_v10 }
 0xb8d   : > { %v3028_v47 = vpop.eup %3027 }
 0xb8e   : > { %v2411_v49 = vmul.f32 0.6931472, %v3028_v47 }
 0xb90   : > { %v2412_v50 = vadd.f32 %v2411_v49, %v2404_v48 }
 0xb92   : > { %2413 = vst.msk [vmem:[%s3648_s24] sm:$0x1] %vm2399_vm11, %v2412_v50 }
 0xb93 PF: > { %s3649_s26 = sld [smem:[#allocation9_spill]]  ;;  %s3089_s27 = smov [#allocation4]  }
 0xb94   : > { %s2426_s1 = sshll.u32 %s3089_s27, 4  ;;  %s2427_s1 = int_to_ptr.vmem [resolvable:$true] %s2426_s1 }
 0xb95   : > { %s3029_s28 = scalar_lea.vmem %s2427_s1, 16  ;;  %s3035_s10 = scalar_lea.vmem %s2427_s1, 32 }
 0xb96   : > { %p3030_p8 = scmp.ne.s32.totalorder %s2427_s1, %s3029_s28  ;;  %p3036_p11 = scmp.lt.s32.totalorder %s2427_s1, %s2427_s1 }
 0xb97   : > { %p3037_p12 = scmp.lt.s32.totalorder %s3035_s10, %s3029_s28 }
 0xb99   : > { %s3650_s2 = sadd.s32 4294967295, %s3649_s26   ;;  %p3038_p13 = por %p3037_p12, %p3036_p11 }
 0xb9a   : > { %p3537_p7 = scmp.eq.s32.totalorder %s3650_s2, 1 }
 0xb9c   : > { %p3031_p9 = pnand %p3030_p8, %p3537_p7 }
 0xb9e   : > { %p3032_p10 = pneg %p3031_p9 }
 0xba0   : > { %p3039_p0 = pnand %p3038_p13, %p3032_p10 }
 0xba2   : > { %3042 = shalt.err (!%p3039_p0)
}
 0xba3   : > { %s3652_s16 = sld [smem:[#allocation25_spill]] }
 0xba9   : > { %s3043_s19 = scalar_lea.hbm %s3652_s16, 16 }
 0xbaa   : > { %p3044_p1 = scmp.ne.s32.totalorder %s3652_s16, %s3043_s19  ;;  %p3049_p4 = scmp.lt.u32.totalorder %s3043_s19, %s3652_s16 }
 0xbac   : > { %p3045_p2 = pnand %p3044_p1, %p3537_p7 }
 0xbae   : > { %p3046_p3 = pneg %p3045_p2 }
 0xbb0   : > { %p3051_p5 = pnand %p3049_p4, %p3046_p3 }
 0xbb2   : > { %3054 = shalt.err (!%p3051_p5)
}
 0xbb3   : > { %2927 = dma.vmem_to_hbm [thread:$0]  (%p3537_p7), %s2427_s1, 16, %s3652_s16, [#allocation5]  }
 0xbb4   : > { %3068 = dma.done.wait (%p3537_p7), [#allocation5], 16  }
 0xbb5   : > { %3070 = vsyncadd (%p3537_p7), [#allocation5], 4294967280 }
 0xbb6 PF: > { %s3653_s7 = sld [smem:[#allocation9_spill]]  ;;  %s3654_s3 = sld [smem:[#allocation8_spill]] }
 0xbb7   : > { %s3655_s28 = sld [smem:[#allocation10_spill]] }
 0xbbc   : > { %s34_s29 = sadd.s32 1, %s3653_s7  }
 0xbbd   : > { %p31_p6 = scmp.ge.s32.totalorder %s34_s29, 4  }
 0xbbf   :  { %33 = sbr.rel (!%p31_p6) target bundleno = 19 (0x13), region = 206 }
 0xbc6   :  { %2448 = vsyncpa [#allocation5], 1 }
 0xbc7   :  { %2450 = vsyncpa [#allocation5 + $0x1], 1 }

</bundles_post_ra>
